<compile_context>
chip_gen: v6e
topology: v6e:2x2x1
jax: 0.10.0
libtpu: 0.0.40
codegen_flags: <defaults>
</compile_context>

<pallas_src>
import jax
import jax.numpy as jnp
from jax import lax
from jax.experimental import pallas as pl
from jax.experimental.pallas import tpu as pltpu


_MM_DTYPE = jnp.bfloat16          # MXU input dtype; accumulation is f32.
_VMEM_LIMIT = 64 * 1024 * 1024    # generous scoped-VMEM limit (safe on v7x/v6e/v5e)


def _round_up(x, m):
    return -(-x // m) * m


def _mm(a, b):
    return jnp.dot(a.astype(_MM_DTYPE), b.astype(_MM_DTYPE),
                   preferred_element_type=jnp.float32)


def _mm_nt(a, b):
    # a @ b.T without materializing a transpose (MXU handles NT natively).
    return lax.dot_general(a.astype(_MM_DTYPE), b.astype(_MM_DTYPE),
                           (((1,), (1,)), ((), ())),
                           preferred_element_type=jnp.float32)


# --------------------------- fused per-row kernel ----------------------------

def _fused_rows_kernel(xc_ref, xw_ref, *refs):
    out_ref = refs[-1]
    (cw1, cb1, cw2, cb2, cw3, cb3,
     ww1, wb1, ww2, wb2, ww3, wb3,
     gw, gb, gv, gc,
     sw1, sb1, sw2, sb2,
     lw1, lb1, lw2, lb2,
     bsw1, bsb1, bsw2, bsb2,
     bew1, beb1, bew2, beb2,
     mw1, mb1, mw2, mb2, mw3, mb3) = [r[...] for r in refs[:-1]]

    def mlp3(x, w1, b1, w2, b2, w3, b3):
        h = jnp.maximum(_mm(x, w1) + b1, 0.0)
        h = jnp.maximum(_mm(h, w2) + b2, 0.0)
        return _mm(h, w3) + b3

    def mlp2(x, w1, b1, w2, b2):
        h = jnp.maximum(_mm(x, w1) + b1, 0.0)
        return _mm(h, w2) + b2

    xc = xc_ref[...].astype(jnp.float32)
    xw = xw_ref[...].astype(jnp.float32)

    # char_input / word_input (dropout = identity in eval mode).
    char_feat = mlp3(xc, cw1, cb1, cw2, cb2, cw3, cb3)
    word_feat = mlp3(xw, ww1, wb1, ww2, wb2, ww3, wb3)

    # TODO(synk): CrossGate class definition was not provided; standard gated
    # cross fusion used as a placeholder.
    gate_c = jax.nn.sigmoid(_mm(char_feat, gw) + gb)
    gate_w = jax.nn.sigmoid(_mm(word_feat, gv) + gc)
    fused = gate_c * word_feat + gate_w * char_feat

    # TODO(synk): {Trm,GRU,Linear}BasedEncoder not provided; placeholder emits
    # semantic features / zero positional features / label logits from small
    # MLP heads and ignores mask/orders/font/style/coarse inputs.
    semantic = mlp2(fused, sw1, sb1, sw2, sb2)
    label = mlp2(fused, lw1, lb1, lw2, lb2)

    h = semantic                        # semantic + pos (pos placeholder == 0)
    start = mlp2(h, bsw1, bsb1, bsw2, bsb2)
    end = mlp2(h, bew1, beb1, bew2, beb2)
    major = mlp3(semantic, mw1, mb1, mw2, mb2, mw3, mb3)

    tm = xc.shape[0]
    D = start.shape[1]
    od = out_ref.dtype
    ones = jnp.ones((tm, 1), jnp.float32)
    # Packed output slab: [ start (D) | 1 | end (D) | 1 | label (3) | major (1) ]
    out_ref[:, 0:D] = start.astype(od)
    out_ref[:, D:D + 1] = ones.astype(od)
    out_ref[:, D + 1:2 * D + 1] = end.astype(od)
    out_ref[:, 2 * D + 1:2 * D + 2] = ones.astype(od)
    out_ref[:, 2 * D + 2:2 * D + 5] = label.astype(od)
    out_ref[:, 2 * D + 5:2 * D + 6] = major.astype(od)


def _fused_param_list(params):
    out = []
    for name in ("char_input", "word_input"):
        m = params[name]
        out += [m["w1"], m["b1"], m["w2"], m["b2"], m["w3"], m["b3"]]
    g = params["cross_gate"]
    out += [g["wg"], g["bg"], g["vg"], g["cg"]]
    for name in ("enc_semantic", "label_head", "biaffine_start", "biaffine_end"):
        m = params[name]
        out += [m["w1"], m["b1"], m["w2"], m["b2"]]
    m = params["major_predictor"]
    out += [m["w1"], m["b1"], m["w2"], m["b2"], m["w3"], m["b3"]]
    return out


def fused_row_pipeline(char_rows, word_rows, params):
    """One pallas_call over (B*L) row tiles; returns packed (N, 2D+6) slab."""
    N, din = char_rows.shape
    D = params["char_input"]["w3"].shape[1]
    out_w = 2 * D + 6
    plist = _fused_param_list(params)

    # Row-tile selection: biggest tile <= 128, but keep >= 2 grid steps when
    # there is enough work so both v7x TensorCores get rows.
    n8 = _round_up(N, 8)
    tm = min(128, n8)
    if n8 // tm < 2 and n8 >= 16:
        tm = max(8, _round_up(n8 // 2, 8))
    Np = _round_up(n8, tm)

    if Np != N:
        pad = ((0, Np - N), (0, 0))
        char_rows = jnp.pad(char_rows, pad)
        word_rows = jnp.pad(word_rows, pad)

    row_spec = pl.BlockSpec((tm, din), lambda i: (i, 0))
    # Weights: full blocks with a constant index -> fetched once, stay in VMEM.
    # TODO(synk): at large `dim`, add pipeline_mode=pl.Buffered(1) on these to
    # drop the unused second buffer.
    param_specs = [pl.BlockSpec(p.shape, (lambda i, nd=p.ndim: (0,) * nd))
                   for p in plist]

    macs_per_row = (2 * (din * D + 2 * D * D)   # char + word mlp3
                    + 2 * D * D                 # cross gate
                    + 2 * D * D                 # enc_semantic
                    + D * D + 3 * D             # label head
                    + 4 * D * D                 # biaffine start/end MLPs
                    + 2 * D * D + D)            # major predictor
    weight_bytes = sum(int(p.size) * p.dtype.itemsize for p in plist)
    cost = pl.CostEstimate(
        flops=int(2 * macs_per_row * Np),
        transcendentals=int(2 * D * Np),
        bytes_accessed=int(4 * Np * (2 * din + out_w) + weight_bytes))

    out = pl.pallas_call(
        _fused_rows_kernel,
        out_shape=jax.ShapeDtypeStruct((Np, out_w), jnp.float32),
        grid_spec=pltpu.PrefetchScalarGridSpec(
            num_scalar_prefetch=0,
            grid=(Np // tm,),
            in_specs=[row_spec, row_spec] + param_specs,
            out_specs=pl.BlockSpec((tm, out_w), lambda i: (i, 0))),
        compiler_params=pltpu.CompilerParams(
            dimension_semantics=("parallel",),
            vmem_limit_bytes=_VMEM_LIMIT),
        cost_estimate=cost,
    )(char_rows, word_rows, *plist)
    return out[:N]


# ------------------------------ biaffine kernel -------------------------------

def _biaffine_kernel(s_ref, e_ref, k_ref, o_ref):
    # out[b, x, o*L + y] = sum_{i,j} S[b,x,i] * K[i,o,j] * E[b,y,j]
    L = s_ref.shape[1]
    D1 = s_ref.shape[2]
    O = k_ref.shape[1] // D1
    s = s_ref[0]                          # (L, D1)
    e = e_ref[0]                          # (L, D1) -- never pre-transposed
    tmp = _mm(s, k_ref[...])              # (L, O*D1): one MXU matmul over all o
    for o in range(O):                    # static, small (target_dim = 4)
        blk = _mm_nt(tmp[:, o * D1:(o + 1) * D1], e)     # (L, L) = out[x, y]
        o_ref[0, :, o * L:(o + 1) * L] = blk.astype(o_ref.dtype)


def biaffine_grid(biased_start, biased_end, kernel_iot):
    """torch.einsum('bxi,ioj,byj->bxyo', S, K, E) -> (B, L, L, O)."""
    B, L, D1 = biased_start.shape
    O = kernel_iot.shape[1]
    k_mat = kernel_iot.reshape(D1, O * D1)          # [i, o*(D+1)+j]

    cost = pl.CostEstimate(
        flops=int(2 * B * (L * D1 * O * D1 + O * L * L * D1)),
        transcendentals=0,
        bytes_accessed=int(4 * (2 * B * L * D1 + D1 * O * D1 + B * L * O * L)))

    out = pl.pallas_call(
        _biaffine_kernel,
        out_shape=jax.ShapeDtypeStruct((B, L, O * L), jnp.float32),
        grid_spec=pltpu.PrefetchScalarGridSpec(
            num_scalar_prefetch=0,
            grid=(B,),
            in_specs=[pl.BlockSpec((1, L, D1), lambda b: (b, 0, 0)),
                      pl.BlockSpec((1, L, D1), lambda b: (b, 0, 0)),
                      pl.BlockSpec((D1, O * D1), lambda b: (0, 0))],
            out_specs=pl.BlockSpec((1, L, O * L), lambda b: (b, 0, 0))),
        compiler_params=pltpu.CompilerParams(
            dimension_semantics=("parallel",),
            vmem_limit_bytes=_VMEM_LIMIT),
        cost_estimate=cost,
    )(biased_start, biased_end, k_mat)

    # (B, L, O*L) -> (B, L, L, O): tiny layout-only glue to match PyTorch.
    return jnp.transpose(out.reshape(B, L, O, L), (0, 1, 3, 2))


# -------------------------- parameter initialisation --------------------------

def _init_linear(key, din, dout):
    kw, kb = jax.random.split(key)
    s = 1.0 / (din ** 0.5)
    w = jax.random.uniform(kw, (din, dout), jnp.float32, -s, s)
    b = jax.random.uniform(kb, (1, dout), jnp.float32, -s, s)
    return w, b


def _init_mlp3(key, din, dh, dout):
    k1, k2, k3 = jax.random.split(key, 3)
    w1, b1 = _init_linear(k1, din, dh)
    w2, b2 = _init_linear(k2, dh, dh)
    w3, b3 = _init_linear(k3, dh, dout)
    return dict(w1=w1, b1=b1, w2=w2, b2=b2, w3=w3, b3=b3)


def _init_mlp2(key, din, dh, dout):
    k1, k2 = jax.random.split(key)
    w1, b1 = _init_linear(k1, din, dh)
    w2, b2 = _init_linear(k2, dh, dout)
    return dict(w1=w1, b1=b1, w2=w2, b2=b2)


def init_params(key, input_dim, dim, target_dim=4, num_labels=3):
    ks = jax.random.split(key, 9)
    params = {
        "char_input": _init_mlp3(ks[0], input_dim, dim, dim),
        "word_input": _init_mlp3(ks[1], input_dim, dim, dim),
        "major_predictor": _init_mlp3(ks[2], dim, dim, 1),
        "biaffine_start": _init_mlp2(ks[3], dim, dim, dim),
        "biaffine_end": _init_mlp2(ks[4], dim, dim, dim),
        "biaffine_kernel": jax.random.normal(
            ks[5], (dim + 1, target_dim, dim + 1), jnp.float32),
        # placeholder encoder heads (encoder class not provided)
        "label_head": _init_mlp2(ks[6], dim, dim, num_labels),
        "enc_semantic": _init_mlp2(ks[7], dim, dim, dim),
    }
    kg1, kg2 = jax.random.split(ks[8])
    wg, bg = _init_linear(kg1, dim, dim)
    vg, cg = _init_linear(kg2, dim, dim)
    params["cross_gate"] = dict(wg=wg, bg=bg, vg=vg, cg=cg)
    return params


# -------------------------------- forward pass --------------------------------

def second_stage_forward(params, sentence_embedding, sentence_mask, coarse_logit,
                         paragraph_order, sentence_order, font_size, style_mark):
    B, L, two_din = sentence_embedding.shape
    din = two_din // 2
    D = params["char_input"]["w3"].shape[1]
    D1 = D + 1

    # chunk(2, dim=-1)
    char_rows = sentence_embedding[..., :din].reshape(B * L, din)
    word_rows = sentence_embedding[..., din:].reshape(B * L, din)

    # One fused kernel for the full per-row pipeline.
    packed = fused_row_pipeline(char_rows, word_rows, params)   # (B*L, 2D+6)

    biased_start = packed[:, 0:D1].reshape(B, L, D1)
    biased_end = packed[:, D1:2 * D1].reshape(B, L, D1)
    label_logit = packed[:, 2 * D1:2 * D1 + 3].reshape(B, L, 3)
    major_logit = packed[:, 2 * D1 + 3].reshape(B, L)

    grid_logit = biaffine_grid(biased_start, biased_end,
                               params["biaffine_kernel"])       # (B, L, L, 4)

    return {"grid_logit": grid_logit,
            "label_logit": label_logit,
            "major_logit": major_logit}


# ------------------------------------ main -------------------------------------

if __name__ == "__main__":
    B, L, input_dim, dim, mark_num = 2, 8, 32, 32, 5

    key = jax.random.PRNGKey(0)
    k_param, k_emb, k_logit = jax.random.split(key, 3)

    params = init_params(k_param, input_dim, dim)

    sentence_embedding = jax.random.normal(k_emb, (B, L, 2 * input_dim), jnp.float32)
    sentence_mask = jnp.ones((B, L), jnp.int32)
    coarse_logit = jax.random.normal(k_logit, (B, L, 3), jnp.float32)
    paragraph_order = jnp.tile(jnp.arange(L, dtype=jnp.int32)[None, :], (B, 1))
    sentence_order = jnp.tile(jnp.arange(L, dtype=jnp.int32)[None, :], (B, 1))
    font_size = jnp.full((B, L), 12, jnp.int32)
    style_mark = jnp.zeros((B, L, mark_num), jnp.int32)

    fwd = jax.jit(second_stage_forward)
    out = fwd(params, sentence_embedding, sentence_mask, coarse_logit,
              paragraph_order, sentence_order, font_size, style_mark)
    out = jax.block_until_ready(out)

    assert out["grid_logit"].shape == (B, L, L, 4)
    assert out["label_logit"].shape == (B, L, 3)
    assert out["major_logit"].shape == (B, L)
    assert all(bool(jnp.isfinite(v).all()) for v in out.values())

    print("KERNEL_OK")
</pallas_src>

<mosaic_0001>
module attributes {stable_mosaic.version = 11 : i64} {
  func.func @_fused_rows_kernel(%arg0: i32, %arg1: memref<8x32xf32, #tpu.memory_space<vmem>>, %arg2: memref<8x32xf32, #tpu.memory_space<vmem>>, %arg3: memref<32x32xf32, #tpu.memory_space<vmem>>, %arg4: memref<1x32xf32, #tpu.memory_space<vmem>>, %arg5: memref<32x32xf32, #tpu.memory_space<vmem>>, %arg6: memref<1x32xf32, #tpu.memory_space<vmem>>, %arg7: memref<32x32xf32, #tpu.memory_space<vmem>>, %arg8: memref<1x32xf32, #tpu.memory_space<vmem>>, %arg9: memref<32x32xf32, #tpu.memory_space<vmem>>, %arg10: memref<1x32xf32, #tpu.memory_space<vmem>>, %arg11: memref<32x32xf32, #tpu.memory_space<vmem>>, %arg12: memref<1x32xf32, #tpu.memory_space<vmem>>, %arg13: memref<32x32xf32, #tpu.memory_space<vmem>>, %arg14: memref<1x32xf32, #tpu.memory_space<vmem>>, %arg15: memref<32x32xf32, #tpu.memory_space<vmem>>, %arg16: memref<1x32xf32, #tpu.memory_space<vmem>>, %arg17: memref<32x32xf32, #tpu.memory_space<vmem>>, %arg18: memref<1x32xf32, #tpu.memory_space<vmem>>, %arg19: memref<32x32xf32, #tpu.memory_space<vmem>>, %arg20: memref<1x32xf32, #tpu.memory_space<vmem>>, %arg21: memref<32x32xf32, #tpu.memory_space<vmem>>, %arg22: memref<1x32xf32, #tpu.memory_space<vmem>>, %arg23: memref<32x32xf32, #tpu.memory_space<vmem>>, %arg24: memref<1x32xf32, #tpu.memory_space<vmem>>, %arg25: memref<32x3xf32, #tpu.memory_space<vmem>>, %arg26: memref<1x3xf32, #tpu.memory_space<vmem>>, %arg27: memref<32x32xf32, #tpu.memory_space<vmem>>, %arg28: memref<1x32xf32, #tpu.memory_space<vmem>>, %arg29: memref<32x32xf32, #tpu.memory_space<vmem>>, %arg30: memref<1x32xf32, #tpu.memory_space<vmem>>, %arg31: memref<32x32xf32, #tpu.memory_space<vmem>>, %arg32: memref<1x32xf32, #tpu.memory_space<vmem>>, %arg33: memref<32x32xf32, #tpu.memory_space<vmem>>, %arg34: memref<1x32xf32, #tpu.memory_space<vmem>>, %arg35: memref<32x32xf32, #tpu.memory_space<vmem>>, %arg36: memref<1x32xf32, #tpu.memory_space<vmem>>, %arg37: memref<32x32xf32, #tpu.memory_space<vmem>>, %arg38: memref<1x32xf32, #tpu.memory_space<vmem>>, %arg39: memref<32x1xf32, #tpu.memory_space<vmem>>, %arg40: memref<1x1xf32, #tpu.memory_space<vmem>>, %arg41: memref<8x70xf32, #tpu.memory_space<vmem>>) attributes {dimension_semantics = [#tpu.dimension_semantics<parallel>], iteration_bounds = array<i64: 2>, scalar_prefetch = 0 : i64, scratch_operands = 0 : i64, tpu.core_type = #tpu.core_type<tc>, window_params = [{transform_indices = @transform_0, window_bounds = array<i64: 8, 32>}, {transform_indices = @transform_1, window_bounds = array<i64: 8, 32>}, {pipeline_mode = #tpu.pipeline_mode<synchronous>, transform_indices = @transform_2, window_bounds = array<i64: 32, 32>}, {pipeline_mode = #tpu.pipeline_mode<synchronous>, transform_indices = @transform_3, window_bounds = array<i64: 1, 32>}, {pipeline_mode = #tpu.pipeline_mode<synchronous>, transform_indices = @transform_4, window_bounds = array<i64: 32, 32>}, {pipeline_mode = #tpu.pipeline_mode<synchronous>, transform_indices = @transform_5, window_bounds = array<i64: 1, 32>}, {pipeline_mode = #tpu.pipeline_mode<synchronous>, transform_indices = @transform_6, window_bounds = array<i64: 32, 32>}, {pipeline_mode = #tpu.pipeline_mode<synchronous>, transform_indices = @transform_7, window_bounds = array<i64: 1, 32>}, {pipeline_mode = #tpu.pipeline_mode<synchronous>, transform_indices = @transform_8, window_bounds = array<i64: 32, 32>}, {pipeline_mode = #tpu.pipeline_mode<synchronous>, transform_indices = @transform_9, window_bounds = array<i64: 1, 32>}, {pipeline_mode = #tpu.pipeline_mode<synchronous>, transform_indices = @transform_10, window_bounds = array<i64: 32, 32>}, {pipeline_mode = #tpu.pipeline_mode<synchronous>, transform_indices = @transform_11, window_bounds = array<i64: 1, 32>}, {pipeline_mode = #tpu.pipeline_mode<synchronous>, transform_indices = @transform_12, window_bounds = array<i64: 32, 32>}, {pipeline_mode = #tpu.pipeline_mode<synchronous>, transform_indices = @transform_13, window_bounds = array<i64: 1, 32>}, {pipeline_mode = #tpu.pipeline_mode<synchronous>, transform_indices = @transform_14, window_bounds = array<i64: 32, 32>}, {pipeline_mode = #tpu.pipeline_mode<synchronous>, transform_indices = @transform_15, window_bounds = array<i64: 1, 32>}, {pipeline_mode = #tpu.pipeline_mode<synchronous>, transform_indices = @transform_16, window_bounds = array<i64: 32, 32>}, {pipeline_mode = #tpu.pipeline_mode<synchronous>, transform_indices = @transform_17, window_bounds = array<i64: 1, 32>}, {pipeline_mode = #tpu.pipeline_mode<synchronous>, transform_indices = @transform_18, window_bounds = array<i64: 32, 32>}, {pipeline_mode = #tpu.pipeline_mode<synchronous>, transform_indices = @transform_19, window_bounds = array<i64: 1, 32>}, {pipeline_mode = #tpu.pipeline_mode<synchronous>, transform_indices = @transform_20, window_bounds = array<i64: 32, 32>}, {pipeline_mode = #tpu.pipeline_mode<synchronous>, transform_indices = @transform_21, window_bounds = array<i64: 1, 32>}, {pipeline_mode = #tpu.pipeline_mode<synchronous>, transform_indices = @transform_22, window_bounds = array<i64: 32, 32>}, {pipeline_mode = #tpu.pipeline_mode<synchronous>, transform_indices = @transform_23, window_bounds = array<i64: 1, 32>}, {pipeline_mode = #tpu.pipeline_mode<synchronous>, transform_indices = @transform_24, window_bounds = array<i64: 32, 3>}, {pipeline_mode = #tpu.pipeline_mode<synchronous>, transform_indices = @transform_25, window_bounds = array<i64: 1, 3>}, {pipeline_mode = #tpu.pipeline_mode<synchronous>, transform_indices = @transform_26, window_bounds = array<i64: 32, 32>}, {pipeline_mode = #tpu.pipeline_mode<synchronous>, transform_indices = @transform_27, window_bounds = array<i64: 1, 32>}, {pipeline_mode = #tpu.pipeline_mode<synchronous>, transform_indices = @transform_28, window_bounds = array<i64: 32, 32>}, {pipeline_mode = #tpu.pipeline_mode<synchronous>, transform_indices = @transform_29, window_bounds = array<i64: 1, 32>}, {pipeline_mode = #tpu.pipeline_mode<synchronous>, transform_indices = @transform_30, window_bounds = array<i64: 32, 32>}, {pipeline_mode = #tpu.pipeline_mode<synchronous>, transform_indices = @transform_31, window_bounds = array<i64: 1, 32>}, {pipeline_mode = #tpu.pipeline_mode<synchronous>, transform_indices = @transform_32, window_bounds = array<i64: 32, 32>}, {pipeline_mode = #tpu.pipeline_mode<synchronous>, transform_indices = @transform_33, window_bounds = array<i64: 1, 32>}, {pipeline_mode = #tpu.pipeline_mode<synchronous>, transform_indices = @transform_34, window_bounds = array<i64: 32, 32>}, {pipeline_mode = #tpu.pipeline_mode<synchronous>, transform_indices = @transform_35, window_bounds = array<i64: 1, 32>}, {pipeline_mode = #tpu.pipeline_mode<synchronous>, transform_indices = @transform_36, window_bounds = array<i64: 32, 32>}, {pipeline_mode = #tpu.pipeline_mode<synchronous>, transform_indices = @transform_37, window_bounds = array<i64: 1, 32>}, {pipeline_mode = #tpu.pipeline_mode<synchronous>, transform_indices = @transform_38, window_bounds = array<i64: 32, 1>}, {pipeline_mode = #tpu.pipeline_mode<synchronous>, transform_indices = @transform_39, window_bounds = array<i64: 1, 1>}, {transform_indices = @transform_40, window_bounds = array<i64: 8, 70>}]} {
    %c0 = arith.constant 0 : index
    %c0_0 = arith.constant 0 : index
    %0 = vector.load %arg3[%c0, %c0_0] : memref<32x32xf32, #tpu.memory_space<vmem>>, vector<32x32xf32>
    %c0_1 = arith.constant 0 : index
    %c0_2 = arith.constant 0 : index
    %1 = vector.load %arg4[%c0_1, %c0_2] : memref<1x32xf32, #tpu.memory_space<vmem>>, vector<1x32xf32>
    %c0_3 = arith.constant 0 : index
    %c0_4 = arith.constant 0 : index
    %2 = vector.load %arg5[%c0_3, %c0_4] : memref<32x32xf32, #tpu.memory_space<vmem>>, vector<32x32xf32>
    %c0_5 = arith.constant 0 : index
    %c0_6 = arith.constant 0 : index
    %3 = vector.load %arg6[%c0_5, %c0_6] : memref<1x32xf32, #tpu.memory_space<vmem>>, vector<1x32xf32>
    %c0_7 = arith.constant 0 : index
    %c0_8 = arith.constant 0 : index
    %4 = vector.load %arg7[%c0_7, %c0_8] : memref<32x32xf32, #tpu.memory_space<vmem>>, vector<32x32xf32>
    %c0_9 = arith.constant 0 : index
    %c0_10 = arith.constant 0 : index
    %5 = vector.load %arg8[%c0_9, %c0_10] : memref<1x32xf32, #tpu.memory_space<vmem>>, vector<1x32xf32>
    %c0_11 = arith.constant 0 : index
    %c0_12 = arith.constant 0 : index
    %6 = vector.load %arg9[%c0_11, %c0_12] : memref<32x32xf32, #tpu.memory_space<vmem>>, vector<32x32xf32>
    %c0_13 = arith.constant 0 : index
    %c0_14 = arith.constant 0 : index
    %7 = vector.load %arg10[%c0_13, %c0_14] : memref<1x32xf32, #tpu.memory_space<vmem>>, vector<1x32xf32>
    %c0_15 = arith.constant 0 : index
    %c0_16 = arith.constant 0 : index
    %8 = vector.load %arg11[%c0_15, %c0_16] : memref<32x32xf32, #tpu.memory_space<vmem>>, vector<32x32xf32>
    %c0_17 = arith.constant 0 : index
    %c0_18 = arith.constant 0 : index
    %9 = vector.load %arg12[%c0_17, %c0_18] : memref<1x32xf32, #tpu.memory_space<vmem>>, vector<1x32xf32>
    %c0_19 = arith.constant 0 : index
    %c0_20 = arith.constant 0 : index
    %10 = vector.load %arg13[%c0_19, %c0_20] : memref<32x32xf32, #tpu.memory_space<vmem>>, vector<32x32xf32>
    %c0_21 = arith.constant 0 : index
    %c0_22 = arith.constant 0 : index
    %11 = vector.load %arg14[%c0_21, %c0_22] : memref<1x32xf32, #tpu.memory_space<vmem>>, vector<1x32xf32>
    %c0_23 = arith.constant 0 : index
    %c0_24 = arith.constant 0 : index
    %12 = vector.load %arg15[%c0_23, %c0_24] : memref<32x32xf32, #tpu.memory_space<vmem>>, vector<32x32xf32>
    %c0_25 = arith.constant 0 : index
    %c0_26 = arith.constant 0 : index
    %13 = vector.load %arg16[%c0_25, %c0_26] : memref<1x32xf32, #tpu.memory_space<vmem>>, vector<1x32xf32>
    %c0_27 = arith.constant 0 : index
    %c0_28 = arith.constant 0 : index
    %14 = vector.load %arg17[%c0_27, %c0_28] : memref<32x32xf32, #tpu.memory_space<vmem>>, vector<32x32xf32>
    %c0_29 = arith.constant 0 : index
    %c0_30 = arith.constant 0 : index
    %15 = vector.load %arg18[%c0_29, %c0_30] : memref<1x32xf32, #tpu.memory_space<vmem>>, vector<1x32xf32>
    %c0_31 = arith.constant 0 : index
    %c0_32 = arith.constant 0 : index
    %16 = vector.load %arg19[%c0_31, %c0_32] : memref<32x32xf32, #tpu.memory_space<vmem>>, vector<32x32xf32>
    %c0_33 = arith.constant 0 : index
    %c0_34 = arith.constant 0 : index
    %17 = vector.load %arg20[%c0_33, %c0_34] : memref<1x32xf32, #tpu.memory_space<vmem>>, vector<1x32xf32>
    %c0_35 = arith.constant 0 : index
    %c0_36 = arith.constant 0 : index
    %18 = vector.load %arg21[%c0_35, %c0_36] : memref<32x32xf32, #tpu.memory_space<vmem>>, vector<32x32xf32>
    %c0_37 = arith.constant 0 : index
    %c0_38 = arith.constant 0 : index
    %19 = vector.load %arg22[%c0_37, %c0_38] : memref<1x32xf32, #tpu.memory_space<vmem>>, vector<1x32xf32>
    %c0_39 = arith.constant 0 : index
    %c0_40 = arith.constant 0 : index
    %20 = vector.load %arg23[%c0_39, %c0_40] : memref<32x32xf32, #tpu.memory_space<vmem>>, vector<32x32xf32>
    %c0_41 = arith.constant 0 : index
    %c0_42 = arith.constant 0 : index
    %21 = vector.load %arg24[%c0_41, %c0_42] : memref<1x32xf32, #tpu.memory_space<vmem>>, vector<1x32xf32>
    %c0_43 = arith.constant 0 : index
    %c0_44 = arith.constant 0 : index
    %22 = vector.load %arg25[%c0_43, %c0_44] : memref<32x3xf32, #tpu.memory_space<vmem>>, vector<32x3xf32>
    %c0_45 = arith.constant 0 : index
    %c0_46 = arith.constant 0 : index
    %23 = vector.load %arg26[%c0_45, %c0_46] : memref<1x3xf32, #tpu.memory_space<vmem>>, vector<1x3xf32>
    %c0_47 = arith.constant 0 : index
    %c0_48 = arith.constant 0 : index
    %24 = vector.load %arg27[%c0_47, %c0_48] : memref<32x32xf32, #tpu.memory_space<vmem>>, vector<32x32xf32>
    %c0_49 = arith.constant 0 : index
    %c0_50 = arith.constant 0 : index
    %25 = vector.load %arg28[%c0_49, %c0_50] : memref<1x32xf32, #tpu.memory_space<vmem>>, vector<1x32xf32>
    %c0_51 = arith.constant 0 : index
    %c0_52 = arith.constant 0 : index
    %26 = vector.load %arg29[%c0_51, %c0_52] : memref<32x32xf32, #tpu.memory_space<vmem>>, vector<32x32xf32>
    %c0_53 = arith.constant 0 : index
    %c0_54 = arith.constant 0 : index
    %27 = vector.load %arg30[%c0_53, %c0_54] : memref<1x32xf32, #tpu.memory_space<vmem>>, vector<1x32xf32>
    %c0_55 = arith.constant 0 : index
    %c0_56 = arith.constant 0 : index
    %28 = vector.load %arg31[%c0_55, %c0_56] : memref<32x32xf32, #tpu.memory_space<vmem>>, vector<32x32xf32>
    %c0_57 = arith.constant 0 : index
    %c0_58 = arith.constant 0 : index
    %29 = vector.load %arg32[%c0_57, %c0_58] : memref<1x32xf32, #tpu.memory_space<vmem>>, vector<1x32xf32>
    %c0_59 = arith.constant 0 : index
    %c0_60 = arith.constant 0 : index
    %30 = vector.load %arg33[%c0_59, %c0_60] : memref<32x32xf32, #tpu.memory_space<vmem>>, vector<32x32xf32>
    %c0_61 = arith.constant 0 : index
    %c0_62 = arith.constant 0 : index
    %31 = vector.load %arg34[%c0_61, %c0_62] : memref<1x32xf32, #tpu.memory_space<vmem>>, vector<1x32xf32>
    %c0_63 = arith.constant 0 : index
    %c0_64 = arith.constant 0 : index
    %32 = vector.load %arg35[%c0_63, %c0_64] : memref<32x32xf32, #tpu.memory_space<vmem>>, vector<32x32xf32>
    %c0_65 = arith.constant 0 : index
    %c0_66 = arith.constant 0 : index
    %33 = vector.load %arg36[%c0_65, %c0_66] : memref<1x32xf32, #tpu.memory_space<vmem>>, vector<1x32xf32>
    %c0_67 = arith.constant 0 : index
    %c0_68 = arith.constant 0 : index
    %34 = vector.load %arg37[%c0_67, %c0_68] : memref<32x32xf32, #tpu.memory_space<vmem>>, vector<32x32xf32>
    %c0_69 = arith.constant 0 : index
    %c0_70 = arith.constant 0 : index
    %35 = vector.load %arg38[%c0_69, %c0_70] : memref<1x32xf32, #tpu.memory_space<vmem>>, vector<1x32xf32>
    %c0_71 = arith.constant 0 : index
    %c0_72 = arith.constant 0 : index
    %36 = vector.load %arg39[%c0_71, %c0_72] : memref<32x1xf32, #tpu.memory_space<vmem>>, vector<32x1xf32>
    %c0_73 = arith.constant 0 : index
    %c0_74 = arith.constant 0 : index
    %37 = vector.load %arg40[%c0_73, %c0_74] : memref<1x1xf32, #tpu.memory_space<vmem>>, vector<1x1xf32>
    %c0_75 = arith.constant 0 : index
    %c0_76 = arith.constant 0 : index
    %38 = vector.load %arg1[%c0_75, %c0_76] : memref<8x32xf32, #tpu.memory_space<vmem>>, vector<8x32xf32>
    %c0_77 = arith.constant 0 : index
    %c0_78 = arith.constant 0 : index
    %39 = vector.load %arg2[%c0_77, %c0_78] : memref<8x32xf32, #tpu.memory_space<vmem>>, vector<8x32xf32>
    %40 = arith.truncf %38 : vector<8x32xf32> to vector<8x32xbf16>
    %41 = arith.truncf %0 : vector<32x32xf32> to vector<32x32xbf16>
    %cst = arith.constant dense<0.000000e+00> : vector<8x32xf32>
    %42 = tpu.matmul %40, %41, %cst {dimension_numbers = #tpu.dot_dimension_numbers<[1], [0], [0], [1], [0, 0, 1, 1], [], []>} : vector<8x32xbf16>, vector<32x32xbf16>, vector<8x32xf32> -> vector<8x32xf32>
    %43 = vector.broadcast %1 : vector<1x32xf32> to vector<8x32xf32>
    %44 = arith.addf %42, %43 : vector<8x32xf32>
    %cst_79 = arith.constant 0.000000e+00 : f32
    %45 = vector.broadcast %cst_79 : f32 to vector<8x32xf32>
    %46 = arith.maximumf %44, %45 : vector<8x32xf32>
    %47 = arith.truncf %46 : vector<8x32xf32> to vector<8x32xbf16>
    %48 = arith.truncf %2 : vector<32x32xf32> to vector<32x32xbf16>
    %cst_80 = arith.constant dense<0.000000e+00> : vector<8x32xf32>
    %49 = tpu.matmul %47, %48, %cst_80 {dimension_numbers = #tpu.dot_dimension_numbers<[1], [0], [0], [1], [0, 0, 1, 1], [], []>} : vector<8x32xbf16>, vector<32x32xbf16>, vector<8x32xf32> -> vector<8x32xf32>
    %50 = vector.broadcast %3 : vector<1x32xf32> to vector<8x32xf32>
    %51 = arith.addf %49, %50 : vector<8x32xf32>
    %cst_81 = arith.constant 0.000000e+00 : f32
    %52 = vector.broadcast %cst_81 : f32 to vector<8x32xf32>
    %53 = arith.maximumf %51, %52 : vector<8x32xf32>
    %54 = arith.truncf %53 : vector<8x32xf32> to vector<8x32xbf16>
    %55 = arith.truncf %4 : vector<32x32xf32> to vector<32x32xbf16>
    %cst_82 = arith.constant dense<0.000000e+00> : vector<8x32xf32>
    %56 = tpu.matmul %54, %55, %cst_82 {dimension_numbers = #tpu.dot_dimension_numbers<[1], [0], [0], [1], [0, 0, 1, 1], [], []>} : vector<8x32xbf16>, vector<32x32xbf16>, vector<8x32xf32> -> vector<8x32xf32>
    %57 = vector.broadcast %5 : vector<1x32xf32> to vector<8x32xf32>
    %58 = arith.addf %56, %57 : vector<8x32xf32>
    %59 = arith.truncf %39 : vector<8x32xf32> to vector<8x32xbf16>
    %60 = arith.truncf %6 : vector<32x32xf32> to vector<32x32xbf16>
    %cst_83 = arith.constant dense<0.000000e+00> : vector<8x32xf32>
    %61 = tpu.matmul %59, %60, %cst_83 {dimension_numbers = #tpu.dot_dimension_numbers<[1], [0], [0], [1], [0, 0, 1, 1], [], []>} : vector<8x32xbf16>, vector<32x32xbf16>, vector<8x32xf32> -> vector<8x32xf32>
    %62 = vector.broadcast %7 : vector<1x32xf32> to vector<8x32xf32>
    %63 = arith.addf %61, %62 : vector<8x32xf32>
    %cst_84 = arith.constant 0.000000e+00 : f32
    %64 = vector.broadcast %cst_84 : f32 to vector<8x32xf32>
    %65 = arith.maximumf %63, %64 : vector<8x32xf32>
    %66 = arith.truncf %65 : vector<8x32xf32> to vector<8x32xbf16>
    %67 = arith.truncf %8 : vector<32x32xf32> to vector<32x32xbf16>
    %cst_85 = arith.constant dense<0.000000e+00> : vector<8x32xf32>
    %68 = tpu.matmul %66, %67, %cst_85 {dimension_numbers = #tpu.dot_dimension_numbers<[1], [0], [0], [1], [0, 0, 1, 1], [], []>} : vector<8x32xbf16>, vector<32x32xbf16>, vector<8x32xf32> -> vector<8x32xf32>
    %69 = vector.broadcast %9 : vector<1x32xf32> to vector<8x32xf32>
    %70 = arith.addf %68, %69 : vector<8x32xf32>
    %cst_86 = arith.constant 0.000000e+00 : f32
    %71 = vector.broadcast %cst_86 : f32 to vector<8x32xf32>
    %72 = arith.maximumf %70, %71 : vector<8x32xf32>
    %73 = arith.truncf %72 : vector<8x32xf32> to vector<8x32xbf16>
    %74 = arith.truncf %10 : vector<32x32xf32> to vector<32x32xbf16>
    %cst_87 = arith.constant dense<0.000000e+00> : vector<8x32xf32>
    %75 = tpu.matmul %73, %74, %cst_87 {dimension_numbers = #tpu.dot_dimension_numbers<[1], [0], [0], [1], [0, 0, 1, 1], [], []>} : vector<8x32xbf16>, vector<32x32xbf16>, vector<8x32xf32> -> vector<8x32xf32>
    %76 = vector.broadcast %11 : vector<1x32xf32> to vector<8x32xf32>
    %77 = arith.addf %75, %76 : vector<8x32xf32>
    %78 = arith.truncf %58 : vector<8x32xf32> to vector<8x32xbf16>
    %79 = arith.truncf %12 : vector<32x32xf32> to vector<32x32xbf16>
    %cst_88 = arith.constant dense<0.000000e+00> : vector<8x32xf32>
    %80 = tpu.matmul %78, %79, %cst_88 {dimension_numbers = #tpu.dot_dimension_numbers<[1], [0], [0], [1], [0, 0, 1, 1], [], []>} : vector<8x32xbf16>, vector<32x32xbf16>, vector<8x32xf32> -> vector<8x32xf32>
    %81 = vector.broadcast %13 : vector<1x32xf32> to vector<8x32xf32>
    %82 = arith.addf %80, %81 : vector<8x32xf32>
    %83 = arith.negf %82 : vector<8x32xf32>
    %84 = math.exp %83 : vector<8x32xf32>
    %cst_89 = arith.constant 1.000000e+00 : f32
    %85 = vector.broadcast %cst_89 : f32 to vector<8x32xf32>
    %86 = arith.addf %85, %84 : vector<8x32xf32>
    %87 = arith.divf %85, %86 : vector<8x32xf32>
    %88 = arith.truncf %77 : vector<8x32xf32> to vector<8x32xbf16>
    %89 = arith.truncf %14 : vector<32x32xf32> to vector<32x32xbf16>
    %cst_90 = arith.constant dense<0.000000e+00> : vector<8x32xf32>
    %90 = tpu.matmul %88, %89, %cst_90 {dimension_numbers = #tpu.dot_dimension_numbers<[1], [0], [0], [1], [0, 0, 1, 1], [], []>} : vector<8x32xbf16>, vector<32x32xbf16>, vector<8x32xf32> -> vector<8x32xf32>
    %91 = vector.broadcast %15 : vector<1x32xf32> to vector<8x32xf32>
    %92 = arith.addf %90, %91 : vector<8x32xf32>
    %93 = arith.negf %92 : vector<8x32xf32>
    %94 = math.exp %93 : vector<8x32xf32>
    %cst_91 = arith.constant 1.000000e+00 : f32
    %95 = vector.broadcast %cst_91 : f32 to vector<8x32xf32>
    %96 = arith.addf %95, %94 : vector<8x32xf32>
    %97 = arith.divf %95, %96 : vector<8x32xf32>
    %98 = arith.mulf %87, %77 : vector<8x32xf32>
    %99 = arith.mulf %97, %58 : vector<8x32xf32>
    %100 = arith.addf %98, %99 : vector<8x32xf32>
    %101 = arith.truncf %100 : vector<8x32xf32> to vector<8x32xbf16>
    %102 = arith.truncf %16 : vector<32x32xf32> to vector<32x32xbf16>
    %cst_92 = arith.constant dense<0.000000e+00> : vector<8x32xf32>
    %103 = tpu.matmul %101, %102, %cst_92 {dimension_numbers = #tpu.dot_dimension_numbers<[1], [0], [0], [1], [0, 0, 1, 1], [], []>} : vector<8x32xbf16>, vector<32x32xbf16>, vector<8x32xf32> -> vector<8x32xf32>
    %104 = vector.broadcast %17 : vector<1x32xf32> to vector<8x32xf32>
    %105 = arith.addf %103, %104 : vector<8x32xf32>
    %cst_93 = arith.constant 0.000000e+00 : f32
    %106 = vector.broadcast %cst_93 : f32 to vector<8x32xf32>
    %107 = arith.maximumf %105, %106 : vector<8x32xf32>
    %108 = arith.truncf %107 : vector<8x32xf32> to vector<8x32xbf16>
    %109 = arith.truncf %18 : vector<32x32xf32> to vector<32x32xbf16>
    %cst_94 = arith.constant dense<0.000000e+00> : vector<8x32xf32>
    %110 = tpu.matmul %108, %109, %cst_94 {dimension_numbers = #tpu.dot_dimension_numbers<[1], [0], [0], [1], [0, 0, 1, 1], [], []>} : vector<8x32xbf16>, vector<32x32xbf16>, vector<8x32xf32> -> vector<8x32xf32>
    %111 = vector.broadcast %19 : vector<1x32xf32> to vector<8x32xf32>
    %112 = arith.addf %110, %111 : vector<8x32xf32>
    %113 = arith.truncf %100 : vector<8x32xf32> to vector<8x32xbf16>
    %114 = arith.truncf %20 : vector<32x32xf32> to vector<32x32xbf16>
    %cst_95 = arith.constant dense<0.000000e+00> : vector<8x32xf32>
    %115 = tpu.matmul %113, %114, %cst_95 {dimension_numbers = #tpu.dot_dimension_numbers<[1], [0], [0], [1], [0, 0, 1, 1], [], []>} : vector<8x32xbf16>, vector<32x32xbf16>, vector<8x32xf32> -> vector<8x32xf32>
    %116 = vector.broadcast %21 : vector<1x32xf32> to vector<8x32xf32>
    %117 = arith.addf %115, %116 : vector<8x32xf32>
    %cst_96 = arith.constant 0.000000e+00 : f32
    %118 = vector.broadcast %cst_96 : f32 to vector<8x32xf32>
    %119 = arith.maximumf %117, %118 : vector<8x32xf32>
    %120 = arith.truncf %119 : vector<8x32xf32> to vector<8x32xbf16>
    %121 = arith.truncf %22 : vector<32x3xf32> to vector<32x3xbf16>
    %cst_97 = arith.constant dense<0.000000e+00> : vector<8x3xf32>
    %122 = tpu.matmul %120, %121, %cst_97 {dimension_numbers = #tpu.dot_dimension_numbers<[1], [0], [0], [1], [0, 0, 1, 1], [], []>} : vector<8x32xbf16>, vector<32x3xbf16>, vector<8x3xf32> -> vector<8x3xf32>
    %123 = vector.broadcast %23 : vector<1x3xf32> to vector<8x3xf32>
    %124 = arith.addf %122, %123 : vector<8x3xf32>
    %125 = arith.truncf %112 : vector<8x32xf32> to vector<8x32xbf16>
    %126 = arith.truncf %24 : vector<32x32xf32> to vector<32x32xbf16>
    %cst_98 = arith.constant dense<0.000000e+00> : vector<8x32xf32>
    %127 = tpu.matmul %125, %126, %cst_98 {dimension_numbers = #tpu.dot_dimension_numbers<[1], [0], [0], [1], [0, 0, 1, 1], [], []>} : vector<8x32xbf16>, vector<32x32xbf16>, vector<8x32xf32> -> vector<8x32xf32>
    %128 = vector.broadcast %25 : vector<1x32xf32> to vector<8x32xf32>
    %129 = arith.addf %127, %128 : vector<8x32xf32>
    %cst_99 = arith.constant 0.000000e+00 : f32
    %130 = vector.broadcast %cst_99 : f32 to vector<8x32xf32>
    %131 = arith.maximumf %129, %130 : vector<8x32xf32>
    %132 = arith.truncf %131 : vector<8x32xf32> to vector<8x32xbf16>
    %133 = arith.truncf %26 : vector<32x32xf32> to vector<32x32xbf16>
    %cst_100 = arith.constant dense<0.000000e+00> : vector<8x32xf32>
    %134 = tpu.matmul %132, %133, %cst_100 {dimension_numbers = #tpu.dot_dimension_numbers<[1], [0], [0], [1], [0, 0, 1, 1], [], []>} : vector<8x32xbf16>, vector<32x32xbf16>, vector<8x32xf32> -> vector<8x32xf32>
    %135 = vector.broadcast %27 : vector<1x32xf32> to vector<8x32xf32>
    %136 = arith.addf %134, %135 : vector<8x32xf32>
    %137 = arith.truncf %112 : vector<8x32xf32> to vector<8x32xbf16>
    %138 = arith.truncf %28 : vector<32x32xf32> to vector<32x32xbf16>
    %cst_101 = arith.constant dense<0.000000e+00> : vector<8x32xf32>
    %139 = tpu.matmul %137, %138, %cst_101 {dimension_numbers = #tpu.dot_dimension_numbers<[1], [0], [0], [1], [0, 0, 1, 1], [], []>} : vector<8x32xbf16>, vector<32x32xbf16>, vector<8x32xf32> -> vector<8x32xf32>
    %140 = vector.broadcast %29 : vector<1x32xf32> to vector<8x32xf32>
    %141 = arith.addf %139, %140 : vector<8x32xf32>
    %cst_102 = arith.constant 0.000000e+00 : f32
    %142 = vector.broadcast %cst_102 : f32 to vector<8x32xf32>
    %143 = arith.maximumf %141, %142 : vector<8x32xf32>
    %144 = arith.truncf %143 : vector<8x32xf32> to vector<8x32xbf16>
    %145 = arith.truncf %30 : vector<32x32xf32> to vector<32x32xbf16>
    %cst_103 = arith.constant dense<0.000000e+00> : vector<8x32xf32>
    %146 = tpu.matmul %144, %145, %cst_103 {dimension_numbers = #tpu.dot_dimension_numbers<[1], [0], [0], [1], [0, 0, 1, 1], [], []>} : vector<8x32xbf16>, vector<32x32xbf16>, vector<8x32xf32> -> vector<8x32xf32>
    %147 = vector.broadcast %31 : vector<1x32xf32> to vector<8x32xf32>
    %148 = arith.addf %146, %147 : vector<8x32xf32>
    %149 = arith.truncf %112 : vector<8x32xf32> to vector<8x32xbf16>
    %150 = arith.truncf %32 : vector<32x32xf32> to vector<32x32xbf16>
    %cst_104 = arith.constant dense<0.000000e+00> : vector<8x32xf32>
    %151 = tpu.matmul %149, %150, %cst_104 {dimension_numbers = #tpu.dot_dimension_numbers<[1], [0], [0], [1], [0, 0, 1, 1], [], []>} : vector<8x32xbf16>, vector<32x32xbf16>, vector<8x32xf32> -> vector<8x32xf32>
    %152 = vector.broadcast %33 : vector<1x32xf32> to vector<8x32xf32>
    %153 = arith.addf %151, %152 : vector<8x32xf32>
    %cst_105 = arith.constant 0.000000e+00 : f32
    %154 = vector.broadcast %cst_105 : f32 to vector<8x32xf32>
    %155 = arith.maximumf %153, %154 : vector<8x32xf32>
    %156 = arith.truncf %155 : vector<8x32xf32> to vector<8x32xbf16>
    %157 = arith.truncf %34 : vector<32x32xf32> to vector<32x32xbf16>
    %cst_106 = arith.constant dense<0.000000e+00> : vector<8x32xf32>
    %158 = tpu.matmul %156, %157, %cst_106 {dimension_numbers = #tpu.dot_dimension_numbers<[1], [0], [0], [1], [0, 0, 1, 1], [], []>} : vector<8x32xbf16>, vector<32x32xbf16>, vector<8x32xf32> -> vector<8x32xf32>
    %159 = vector.broadcast %35 : vector<1x32xf32> to vector<8x32xf32>
    %160 = arith.addf %158, %159 : vector<8x32xf32>
    %cst_107 = arith.constant 0.000000e+00 : f32
    %161 = vector.broadcast %cst_107 : f32 to vector<8x32xf32>
    %162 = arith.maximumf %160, %161 : vector<8x32xf32>
    %163 = arith.truncf %162 : vector<8x32xf32> to vector<8x32xbf16>
    %164 = arith.truncf %36 : vector<32x1xf32> to vector<32x1xbf16>
    %cst_108 = arith.constant dense<0.000000e+00> : vector<8x1xf32>
    %165 = tpu.matmul %163, %164, %cst_108 {dimension_numbers = #tpu.dot_dimension_numbers<[1], [0], [0], [1], [0, 0, 1, 1], [], []>} : vector<8x32xbf16>, vector<32x1xbf16>, vector<8x1xf32> -> vector<8x1xf32>
    %166 = vector.broadcast %37 : vector<1x1xf32> to vector<8x1xf32>
    %167 = arith.addf %165, %166 : vector<8x1xf32>
    %cst_109 = arith.constant 1.000000e+00 : f32
    %168 = vector.broadcast %cst_109 : f32 to vector<8x1xf32>
    %c0_110 = arith.constant 0 : index
    %c0_111 = arith.constant 0 : index
    %169 = vector.load %arg41[%c0_110, %c0_111] : memref<8x70xf32, #tpu.memory_space<vmem>>, vector<8x32xf32>
    tpu.vector_store %arg41[%c0_110, %c0_111], %136 {strides = array<i32>} : memref<8x70xf32, #tpu.memory_space<vmem>>, vector<8x32xf32>,
    %c0_112 = arith.constant 0 : index
    %c32 = arith.constant 32 : index
    %170 = vector.load %arg41[%c0_112, %c32] : memref<8x70xf32, #tpu.memory_space<vmem>>, vector<8x1xf32>
    tpu.vector_store %arg41[%c0_112, %c32], %168 {strides = array<i32>} : memref<8x70xf32, #tpu.memory_space<vmem>>, vector<8x1xf32>,
    %c0_113 = arith.constant 0 : index
    %c33 = arith.constant 33 : index
    %171 = vector.load %arg41[%c0_113, %c33] : memref<8x70xf32, #tpu.memory_space<vmem>>, vector<8x32xf32>
    tpu.vector_store %arg41[%c0_113, %c33], %148 {strides = array<i32>} : memref<8x70xf32, #tpu.memory_space<vmem>>, vector<8x32xf32>,
    %c0_114 = arith.constant 0 : index
    %c65 = arith.constant 65 : index
    %172 = vector.load %arg41[%c0_114, %c65] : memref<8x70xf32, #tpu.memory_space<vmem>>, vector<8x1xf32>
    tpu.vector_store %arg41[%c0_114, %c65], %168 {strides = array<i32>} : memref<8x70xf32, #tpu.memory_space<vmem>>, vector<8x1xf32>,
    %c0_115 = arith.constant 0 : index
    %c66 = arith.constant 66 : index
    %173 = vector.load %arg41[%c0_115, %c66] : memref<8x70xf32, #tpu.memory_space<vmem>>, vector<8x3xf32>
    tpu.vector_store %arg41[%c0_115, %c66], %124 {strides = array<i32>} : memref<8x70xf32, #tpu.memory_space<vmem>>, vector<8x3xf32>,
    %c0_116 = arith.constant 0 : index
    %c69 = arith.constant 69 : index
    %174 = vector.load %arg41[%c0_116, %c69] : memref<8x70xf32, #tpu.memory_space<vmem>>, vector<8x1xf32>
    tpu.vector_store %arg41[%c0_116, %c69], %167 {strides = array<i32>} : memref<8x70xf32, #tpu.memory_space<vmem>>, vector<8x1xf32>,
    return
  }
  func.func @transform_0(%arg0: i32) -> (i32, i32) {
    %c0_i32 = arith.constant 0 : i32
    %c0_i32_0 = arith.constant 0 : i32
    return %arg0, %c0_i32 : i32, i32
  }
  func.func @transform_1(%arg0: i32) -> (i32, i32) {
    %c0_i32 = arith.constant 0 : i32
    %c0_i32_0 = arith.constant 0 : i32
    return %arg0, %c0_i32 : i32, i32
  }
  func.func @transform_2(%arg0: i32) -> (i32, i32) {
    %c0_i32 = arith.constant 0 : i32
    %c0_i32_0 = arith.constant 0 : i32
    %c0_i32_1 = arith.constant 0 : i32
    return %c0_i32, %c0_i32_0 : i32, i32
  }
  func.func @transform_3(%arg0: i32) -> (i32, i32) {
    %c0_i32 = arith.constant 0 : i32
    %c0_i32_0 = arith.constant 0 : i32
    %c0_i32_1 = arith.constant 0 : i32
    return %c0_i32, %c0_i32_0 : i32, i32
  }
  func.func @transform_4(%arg0: i32) -> (i32, i32) {
    %c0_i32 = arith.constant 0 : i32
    %c0_i32_0 = arith.constant 0 : i32
    %c0_i32_1 = arith.constant 0 : i32
    return %c0_i32, %c0_i32_0 : i32, i32
  }
  func.func @transform_5(%arg0: i32) -> (i32, i32) {
    %c0_i32 = arith.constant 0 : i32
    %c0_i32_0 = arith.constant 0 : i32
    %c0_i32_1 = arith.constant 0 : i32
    return %c0_i32, %c0_i32_0 : i32, i32
  }
  func.func @transform_6(%arg0: i32) -> (i32, i32) {
    %c0_i32 = arith.constant 0 : i32
    %c0_i32_0 = arith.constant 0 : i32
    %c0_i32_1 = arith.constant 0 : i32
    return %c0_i32, %c0_i32_0 : i32, i32
  }
  func.func @transform_7(%arg0: i32) -> (i32, i32) {
    %c0_i32 = arith.constant 0 : i32
    %c0_i32_0 = arith.constant 0 : i32
    %c0_i32_1 = arith.constant 0 : i32
    return %c0_i32, %c0_i32_0 : i32, i32
  }
  func.func @transform_8(%arg0: i32) -> (i32, i32) {
    %c0_i32 = arith.constant 0 : i32
    %c0_i32_0 = arith.constant 0 : i32
    %c0_i32_1 = arith.constant 0 : i32
    return %c0_i32, %c0_i32_0 : i32, i32
  }
  func.func @transform_9(%arg0: i32) -> (i32, i32) {
    %c0_i32 = arith.constant 0 : i32
    %c0_i32_0 = arith.constant 0 : i32
    %c0_i32_1 = arith.constant 0 : i32
    return %c0_i32, %c0_i32_0 : i32, i32
  }
  func.func @transform_10(%arg0: i32) -> (i32, i32) {
    %c0_i32 = arith.constant 0 : i32
    %c0_i32_0 = arith.constant 0 : i32
    %c0_i32_1 = arith.constant 0 : i32
    return %c0_i32, %c0_i32_0 : i32, i32
  }
  func.func @transform_11(%arg0: i32) -> (i32, i32) {
    %c0_i32 = arith.constant 0 : i32
    %c0_i32_0 = arith.constant 0 : i32
    %c0_i32_1 = arith.constant 0 : i32
    return %c0_i32, %c0_i32_0 : i32, i32
  }
  func.func @transform_12(%arg0: i32) -> (i32, i32) {
    %c0_i32 = arith.constant 0 : i32
    %c0_i32_0 = arith.constant 0 : i32
    %c0_i32_1 = arith.constant 0 : i32
    return %c0_i32, %c0_i32_0 : i32, i32
  }
  func.func @transform_13(%arg0: i32) -> (i32, i32) {
    %c0_i32 = arith.constant 0 : i32
    %c0_i32_0 = arith.constant 0 : i32
    %c0_i32_1 = arith.constant 0 : i32
    return %c0_i32, %c0_i32_0 : i32, i32
  }
  func.func @transform_14(%arg0: i32) -> (i32, i32) {
    %c0_i32 = arith.constant 0 : i32
    %c0_i32_0 = arith.constant 0 : i32
    %c0_i32_1 = arith.constant 0 : i32
    return %c0_i32, %c0_i32_0 : i32, i32
  }
  func.func @transform_15(%arg0: i32) -> (i32, i32) {
    %c0_i32 = arith.constant 0 : i32
    %c0_i32_0 = arith.constant 0 : i32
    %c0_i32_1 = arith.constant 0 : i32
    return %c0_i32, %c0_i32_0 : i32, i32
  }
  func.func @transform_16(%arg0: i32) -> (i32, i32) {
    %c0_i32 = arith.constant 0 : i32
    %c0_i32_0 = arith.constant 0 : i32
    %c0_i32_1 = arith.constant 0 : i32
    return %c0_i32, %c0_i32_0 : i32, i32
  }
  func.func @transform_17(%arg0: i32) -> (i32, i32) {
    %c0_i32 = arith.constant 0 : i32
    %c0_i32_0 = arith.constant 0 : i32
    %c0_i32_1 = arith.constant 0 : i32
    return %c0_i32, %c0_i32_0 : i32, i32
  }
  func.func @transform_18(%arg0: i32) -> (i32, i32) {
    %c0_i32 = arith.constant 0 : i32
    %c0_i32_0 = arith.constant 0 : i32
    %c0_i32_1 = arith.constant 0 : i32
    return %c0_i32, %c0_i32_0 : i32, i32
  }
  func.func @transform_19(%arg0: i32) -> (i32, i32) {
    %c0_i32 = arith.constant 0 : i32
    %c0_i32_0 = arith.constant 0 : i32
    %c0_i32_1 = arith.constant 0 : i32
    return %c0_i32, %c0_i32_0 : i32, i32
  }
  func.func @transform_20(%arg0: i32) -> (i32, i32) {
    %c0_i32 = arith.constant 0 : i32
    %c0_i32_0 = arith.constant 0 : i32
    %c0_i32_1 = arith.constant 0 : i32
    return %c0_i32, %c0_i32_0 : i32, i32
  }
  func.func @transform_21(%arg0: i32) -> (i32, i32) {
    %c0_i32 = arith.constant 0 : i32
    %c0_i32_0 = arith.constant 0 : i32
    %c0_i32_1 = arith.constant 0 : i32
    return %c0_i32, %c0_i32_0 : i32, i32
  }
  func.func @transform_22(%arg0: i32) -> (i32, i32) {
    %c0_i32 = arith.constant 0 : i32
    %c0_i32_0 = arith.constant 0 : i32
    %c0_i32_1 = arith.constant 0 : i32
    return %c0_i32, %c0_i32_0 : i32, i32
  }
  func.func @transform_23(%arg0: i32) -> (i32, i32) {
    %c0_i32 = arith.constant 0 : i32
    %c0_i32_0 = arith.constant 0 : i32
    %c0_i32_1 = arith.constant 0 : i32
    return %c0_i32, %c0_i32_0 : i32, i32
  }
  func.func @transform_24(%arg0: i32) -> (i32, i32) {
    %c0_i32 = arith.constant 0 : i32
    %c0_i32_0 = arith.constant 0 : i32
    %c0_i32_1 = arith.constant 0 : i32
    return %c0_i32, %c0_i32_0 : i32, i32
  }
  func.func @transform_25(%arg0: i32) -> (i32, i32) {
    %c0_i32 = arith.constant 0 : i32
    %c0_i32_0 = arith.constant 0 : i32
    %c0_i32_1 = arith.constant 0 : i32
    return %c0_i32, %c0_i32_0 : i32, i32
  }
  func.func @transform_26(%arg0: i32) -> (i32, i32) {
    %c0_i32 = arith.constant 0 : i32
    %c0_i32_0 = arith.constant 0 : i32
    %c0_i32_1 = arith.constant 0 : i32
    return %c0_i32, %c0_i32_0 : i32, i32
  }
  func.func @transform_27(%arg0: i32) -> (i32, i32) {
    %c0_i32 = arith.constant 0 : i32
    %c0_i32_0 = arith.constant 0 : i32
    %c0_i32_1 = arith.constant 0 : i32
    return %c0_i32, %c0_i32_0 : i32, i32
  }
  func.func @transform_28(%arg0: i32) -> (i32, i32) {
    %c0_i32 = arith.constant 0 : i32
    %c0_i32_0 = arith.constant 0 : i32
    %c0_i32_1 = arith.constant 0 : i32
    return %c0_i32, %c0_i32_0 : i32, i32
  }
  func.func @transform_29(%arg0: i32) -> (i32, i32) {
    %c0_i32 = arith.constant 0 : i32
    %c0_i32_0 = arith.constant 0 : i32
    %c0_i32_1 = arith.constant 0 : i32
    return %c0_i32, %c0_i32_0 : i32, i32
  }
  func.func @transform_30(%arg0: i32) -> (i32, i32) {
    %c0_i32 = arith.constant 0 : i32
    %c0_i32_0 = arith.constant 0 : i32
    %c0_i32_1 = arith.constant 0 : i32
    return %c0_i32, %c0_i32_0 : i32, i32
  }
  func.func @transform_31(%arg0: i32) -> (i32, i32) {
    %c0_i32 = arith.constant 0 : i32
    %c0_i32_0 = arith.constant 0 : i32
    %c0_i32_1 = arith.constant 0 : i32
    return %c0_i32, %c0_i32_0 : i32, i32
  }
  func.func @transform_32(%arg0: i32) -> (i32, i32) {
    %c0_i32 = arith.constant 0 : i32
    %c0_i32_0 = arith.constant 0 : i32
    %c0_i32_1 = arith.constant 0 : i32
    return %c0_i32, %c0_i32_0 : i32, i32
  }
  func.func @transform_33(%arg0: i32) -> (i32, i32) {
    %c0_i32 = arith.constant 0 : i32
    %c0_i32_0 = arith.constant 0 : i32
    %c0_i32_1 = arith.constant 0 : i32
    return %c0_i32, %c0_i32_0 : i32, i32
  }
  func.func @transform_34(%arg0: i32) -> (i32, i32) {
    %c0_i32 = arith.constant 0 : i32
    %c0_i32_0 = arith.constant 0 : i32
    %c0_i32_1 = arith.constant 0 : i32
    return %c0_i32, %c0_i32_0 : i32, i32
  }
  func.func @transform_35(%arg0: i32) -> (i32, i32) {
    %c0_i32 = arith.constant 0 : i32
    %c0_i32_0 = arith.constant 0 : i32
    %c0_i32_1 = arith.constant 0 : i32
    return %c0_i32, %c0_i32_0 : i32, i32
  }
  func.func @transform_36(%arg0: i32) -> (i32, i32) {
    %c0_i32 = arith.constant 0 : i32
    %c0_i32_0 = arith.constant 0 : i32
    %c0_i32_1 = arith.constant 0 : i32
    return %c0_i32, %c0_i32_0 : i32, i32
  }
  func.func @transform_37(%arg0: i32) -> (i32, i32) {
    %c0_i32 = arith.constant 0 : i32
    %c0_i32_0 = arith.constant 0 : i32
    %c0_i32_1 = arith.constant 0 : i32
    return %c0_i32, %c0_i32_0 : i32, i32
  }
  func.func @transform_38(%arg0: i32) -> (i32, i32) {
    %c0_i32 = arith.constant 0 : i32
    %c0_i32_0 = arith.constant 0 : i32
    %c0_i32_1 = arith.constant 0 : i32
    return %c0_i32, %c0_i32_0 : i32, i32
  }
  func.func @transform_39(%arg0: i32) -> (i32, i32) {
    %c0_i32 = arith.constant 0 : i32
    %c0_i32_0 = arith.constant 0 : i32
    %c0_i32_1 = arith.constant 0 : i32
    return %c0_i32, %c0_i32_0 : i32, i32
  }
  func.func @transform_40(%arg0: i32) -> (i32, i32) {
    %c0_i32 = arith.constant 0 : i32
    %c0_i32_0 = arith.constant 0 : i32
    return %arg0, %c0_i32 : i32, i32
  }
}

module attributes {stable_mosaic.version = 11 : i64} {
  func.func @_biaffine_kernel(%arg0: i32, %arg1: memref<1x8x33xf32, #tpu.memory_space<vmem>>, %arg2: memref<1x8x33xf32, #tpu.memory_space<vmem>>, %arg3: memref<33x132xf32, #tpu.memory_space<vmem>>, %arg4: memref<1x8x32xf32, #tpu.memory_space<vmem>>) attributes {dimension_semantics = [#tpu.dimension_semantics<parallel>], iteration_bounds = array<i64: 2>, scalar_prefetch = 0 : i64, scratch_operands = 0 : i64, tpu.core_type = #tpu.core_type<tc>, window_params = [{transform_indices = @transform_0, window_bounds = array<i64: 1, 8, 33>}, {transform_indices = @transform_1, window_bounds = array<i64: 1, 8, 33>}, {pipeline_mode = #tpu.pipeline_mode<synchronous>, transform_indices = @transform_2, window_bounds = array<i64: 33, 132>}, {transform_indices = @transform_3, window_bounds = array<i64: 1, 8, 32>}]} {
    %c0 = arith.constant 0 : index
    %c0_0 = arith.constant 0 : index
    %c0_1 = arith.constant 0 : index
    %0 = vector.load %arg1[%c0, %c0_0, %c0_1] : memref<1x8x33xf32, #tpu.memory_space<vmem>>, vector<1x8x33xf32>
    %1 = vector.shape_cast %0 : vector<1x8x33xf32> to vector<8x33xf32>
    %c0_2 = arith.constant 0 : index
    %c0_3 = arith.constant 0 : index
    %c0_4 = arith.constant 0 : index
    %2 = vector.load %arg2[%c0_2, %c0_3, %c0_4] : memref<1x8x33xf32, #tpu.memory_space<vmem>>, vector<1x8x33xf32>
    %3 = vector.shape_cast %2 : vector<1x8x33xf32> to vector<8x33xf32>
    %c0_5 = arith.constant 0 : index
    %c0_6 = arith.constant 0 : index
    %4 = vector.load %arg3[%c0_5, %c0_6] : memref<33x132xf32, #tpu.memory_space<vmem>>, vector<33x132xf32>
    %5 = arith.truncf %1 : vector<8x33xf32> to vector<8x33xbf16>
    %6 = arith.truncf %4 : vector<33x132xf32> to vector<33x132xbf16>
    %cst = arith.constant dense<0.000000e+00> : vector<8x132xf32>
    %7 = tpu.matmul %5, %6, %cst {dimension_numbers = #tpu.dot_dimension_numbers<[1], [0], [0], [1], [0, 0, 1, 1], [], []>} : vector<8x33xbf16>, vector<33x132xbf16>, vector<8x132xf32> -> vector<8x132xf32>
    %8 = vector.extract_strided_slice %7 {offsets = [0, 0], sizes = [8, 33], strides = [1, 1]} : vector<8x132xf32> to vector<8x33xf32>
    %9 = arith.truncf %8 : vector<8x33xf32> to vector<8x33xbf16>
    %10 = arith.truncf %3 : vector<8x33xf32> to vector<8x33xbf16>
    %cst_7 = arith.constant dense<0.000000e+00> : vector<8x8xf32>
    %11 = tpu.matmul %9, %10, %cst_7 {dimension_numbers = #tpu.dot_dimension_numbers<[1], [1], [0], [0], [0, 0, 1, 0], [], []>} : vector<8x33xbf16>, vector<8x33xbf16>, vector<8x8xf32> -> vector<8x8xf32>
    %c0_8 = arith.constant 0 : index
    %c0_9 = arith.constant 0 : index
    %c0_10 = arith.constant 0 : index
    %12 = vector.load %arg4[%c0_8, %c0_9, %c0_10] : memref<1x8x32xf32, #tpu.memory_space<vmem>>, vector<1x8x8xf32>
    %13 = vector.shape_cast %12 : vector<1x8x8xf32> to vector<8x8xf32>
    %14 = vector.shape_cast %11 : vector<8x8xf32> to vector<1x8x8xf32>
    tpu.vector_store %arg4[%c0_8, %c0_9, %c0_10], %14 {strides = array<i32>} : memref<1x8x32xf32, #tpu.memory_space<vmem>>, vector<1x8x8xf32>,
    %15 = vector.extract_strided_slice %7 {offsets = [0, 33], sizes = [8, 33], strides = [1, 1]} : vector<8x132xf32> to vector<8x33xf32>
    %16 = arith.truncf %15 : vector<8x33xf32> to vector<8x33xbf16>
    %17 = arith.truncf %3 : vector<8x33xf32> to vector<8x33xbf16>
    %cst_11 = arith.constant dense<0.000000e+00> : vector<8x8xf32>
    %18 = tpu.matmul %16, %17, %cst_11 {dimension_numbers = #tpu.dot_dimension_numbers<[1], [1], [0], [0], [0, 0, 1, 0], [], []>} : vector<8x33xbf16>, vector<8x33xbf16>, vector<8x8xf32> -> vector<8x8xf32>
    %c0_12 = arith.constant 0 : index
    %c0_13 = arith.constant 0 : index
    %c8 = arith.constant 8 : index
    %19 = vector.load %arg4[%c0_12, %c0_13, %c8] : memref<1x8x32xf32, #tpu.memory_space<vmem>>, vector<1x8x8xf32>
    %20 = vector.shape_cast %19 : vector<1x8x8xf32> to vector<8x8xf32>
    %21 = vector.shape_cast %18 : vector<8x8xf32> to vector<1x8x8xf32>
    tpu.vector_store %arg4[%c0_12, %c0_13, %c8], %21 {strides = array<i32>} : memref<1x8x32xf32, #tpu.memory_space<vmem>>, vector<1x8x8xf32>,
    %22 = vector.extract_strided_slice %7 {offsets = [0, 66], sizes = [8, 33], strides = [1, 1]} : vector<8x132xf32> to vector<8x33xf32>
    %23 = arith.truncf %22 : vector<8x33xf32> to vector<8x33xbf16>
    %24 = arith.truncf %3 : vector<8x33xf32> to vector<8x33xbf16>
    %cst_14 = arith.constant dense<0.000000e+00> : vector<8x8xf32>
    %25 = tpu.matmul %23, %24, %cst_14 {dimension_numbers = #tpu.dot_dimension_numbers<[1], [1], [0], [0], [0, 0, 1, 0], [], []>} : vector<8x33xbf16>, vector<8x33xbf16>, vector<8x8xf32> -> vector<8x8xf32>
    %c0_15 = arith.constant 0 : index
    %c0_16 = arith.constant 0 : index
    %c16 = arith.constant 16 : index
    %26 = vector.load %arg4[%c0_15, %c0_16, %c16] : memref<1x8x32xf32, #tpu.memory_space<vmem>>, vector<1x8x8xf32>
    %27 = vector.shape_cast %26 : vector<1x8x8xf32> to vector<8x8xf32>
    %28 = vector.shape_cast %25 : vector<8x8xf32> to vector<1x8x8xf32>
    tpu.vector_store %arg4[%c0_15, %c0_16, %c16], %28 {strides = array<i32>} : memref<1x8x32xf32, #tpu.memory_space<vmem>>, vector<1x8x8xf32>,
    %29 = vector.extract_strided_slice %7 {offsets = [0, 99], sizes = [8, 33], strides = [1, 1]} : vector<8x132xf32> to vector<8x33xf32>
    %30 = arith.truncf %29 : vector<8x33xf32> to vector<8x33xbf16>
    %31 = arith.truncf %3 : vector<8x33xf32> to vector<8x33xbf16>
    %cst_17 = arith.constant dense<0.000000e+00> : vector<8x8xf32>
    %32 = tpu.matmul %30, %31, %cst_17 {dimension_numbers = #tpu.dot_dimension_numbers<[1], [1], [0], [0], [0, 0, 1, 0], [], []>} : vector<8x33xbf16>, vector<8x33xbf16>, vector<8x8xf32> -> vector<8x8xf32>
    %c0_18 = arith.constant 0 : index
    %c0_19 = arith.constant 0 : index
    %c24 = arith.constant 24 : index
    %33 = vector.load %arg4[%c0_18, %c0_19, %c24] : memref<1x8x32xf32, #tpu.memory_space<vmem>>, vector<1x8x8xf32>
    %34 = vector.shape_cast %33 : vector<1x8x8xf32> to vector<8x8xf32>
    %35 = vector.shape_cast %32 : vector<8x8xf32> to vector<1x8x8xf32>
    tpu.vector_store %arg4[%c0_18, %c0_19, %c24], %35 {strides = array<i32>} : memref<1x8x32xf32, #tpu.memory_space<vmem>>, vector<1x8x8xf32>,
    return
  }
  func.func @transform_0(%arg0: i32) -> (i32, i32, i32) {
    %c0_i32 = arith.constant 0 : i32
    %c0_i32_0 = arith.constant 0 : i32
    %c0_i32_1 = arith.constant 0 : i32
    return %arg0, %c0_i32, %c0_i32_0 : i32, i32, i32
  }
  func.func @transform_1(%arg0: i32) -> (i32, i32, i32) {
    %c0_i32 = arith.constant 0 : i32
    %c0_i32_0 = arith.constant 0 : i32
    %c0_i32_1 = arith.constant 0 : i32
    return %arg0, %c0_i32, %c0_i32_0 : i32, i32, i32
  }
  func.func @transform_2(%arg0: i32) -> (i32, i32) {
    %c0_i32 = arith.constant 0 : i32
    %c0_i32_0 = arith.constant 0 : i32
    %c0_i32_1 = arith.constant 0 : i32
    return %c0_i32, %c0_i32_0 : i32, i32
  }
  func.func @transform_3(%arg0: i32) -> (i32, i32, i32) {
    %c0_i32 = arith.constant 0 : i32
    %c0_i32_0 = arith.constant 0 : i32
    %c0_i32_1 = arith.constant 0 : i32
    return %arg0, %c0_i32, %c0_i32_0 : i32, i32, i32
  }
}

</mosaic_0001>

<bundles_post_ra>
// kernel: squeeze.1
= control target key start
LH: loop header
LB: loop body
LE: loop exit
PB: predicated region body
PF: predicated region fallthrough
CT: control target
= control target key end

     0   :  { %s77_s0 = inlined_call_operand.vmem [shape: f32[16], index: 0, kind: input, shape index: {}]   ;;  %s78_s1 = inlined_call_operand.hbm [shape: f32[2,8], index: 1, kind: output, shape index: {}]  }
   0x1   :  { %v6_v0 = vld [vmem:[%s77_s0] sm:$0x1] }
   0x2   :  { %2 = vsyncpa [#allocation1], 0  ;;  %7 = vst [vmem:[#allocation3] sm:$0x1] %v6_v0  ;;  %vm9_vm0 = vcmask 64512   ;;  %s59_s0 = smov 120  }
   0x3   :  { %s60_s8 = smov [#allocation0]  }
   0x4   :  { %s29_s9 = sshll.u32 %s60_s8, 4  ;;  %s30_s9 = int_to_ptr.vmem [resolvable:$true] %s29_s9 }
   0x5   :  { %s37_s10 = scalar_lea.vmem %s30_s9, 32  ;;  %p42_p1 = scmp.lt.s32.totalorder %s30_s9, %s30_s9 }
   0x6   :  { %p38_p0 = scmp.ne.s32.totalorder %s30_s9, %s37_s10  ;;  %p43_p2 = scmp.lt.s32.totalorder %s37_s10, %s37_s10 }
   0x8   :  { %p44_p3 = por %p43_p2, %p42_p1 }
   0x9   :  { %v11_v1 = vld [vmem:[#allocation3] sm:$0x1]  }
   0xa   :  { %v8_v2 = vld [vmem:[#allocation3] sm:$0x1]   ;;  %12 = vrot.lane.b32.xlu0 %v11_v1, %s59_s0  ;;  %p45_p4 = pnand %p44_p3, %p38_p0 }
   0xb   :  { %10 = vst.msk [vmem:[#allocation2] sm:$0x1] %vm9_vm0, %v8_v2  }
  0x7c   :  { %v13_v3 = vpop.permute.xlu0 %12  }
  0x7d   :  { %16 = vst.msk [vmem:[#allocation2 + $0x1] sm:$0x1] %vm9_vm0, %v13_v3  }
  0x84   :  { %v21_v4 = vld [vmem:[#allocation2] sm:$0x3] }
  0x85   :  { %24 = vst [vmem:[#allocation0] sm:$0x3] %v21_v4 }
  0x86   :  { %48 = shalt.err (!%p45_p4)
}
  0x87   :  { %32 = dma.vmem_to_hbm [thread:$0]  %s30_s9, 32, %s78_s1, [#allocation1]  }
  0x88   :  { %57 = dma.done.wait [#allocation1], 32  }
  0x89   :  { %58 = vsyncadd [#allocation1], 4294967264 }
  0x8a   :  { %34 = vsyncpa [#allocation1], 1 }

// kernel: second_stage_forward.3
= control target key start
LH: loop header
LB: loop body
LE: loop exit
PB: predicated region body
PF: predicated region fallthrough
CT: control target
= control target key end

     0   :  { %s633_s12 = smov 0   ;;  %s704_s0 = inlined_call_operand.vmem [shape: f32[2,8,33], index: 0, kind: input, shape index: {}]   ;;  %s705_s1 = inlined_call_operand.vmem [shape: f32[2,8,33], index: 1, kind: input, shape index: {}]   ;;  %s706_s2 = inlined_call_operand.vmem [shape: f32[33,132], index: 2, kind: input, shape index: {}]   ;;  %s707_s3 = inlined_call_operand.vmem [shape: f32[2,8,32], index: 3, kind: output, shape index: {}]  }
   0x1 LB: > { %s532_s13 = sadd.s32 4294967295, %s602_s12   ;;  %p536_p0 = scmp.ge.s32.totalorder %s602_s12, 1  ;;  %s602_s12 = sphi %s633_s12, %s13_s12  }
   0x2   : > { %p145_p1 = scmp.lt.s32.totalorder %s602_s12, 3 }
   0x4   : > { %p146_p2 = pnand %p536_p0, %p145_p1 }
   0x5   : > { %p171_p3 = scmp.lt.s32.totalorder (!%p146_p2), %s532_s13, 1  ;;  %s607_s15 = smov (!%p146_p2), 29  }
   0x6   : > { %149 = sbr.rel (%p146_p2) target bundleno = 655 (0x28f), region = 32  ;;  %s608_s16 = smov (!%p146_p2), 95  }
   0x7   : > { %s609_s17 = smov (!%p146_p2), 62   ;;  %s610_s21 = smov (!%p146_p2), 8  }
   0x8   : > { %s611_s22 = smov (!%p146_p2), 16   ;;  %s612_s23 = smov (!%p146_p2), 24  }
   0xb   : > { %v195_v0 = vld [vmem:[%s706_s2 + $0x48] sm:$0x1]  ;;  %vm207_vm0 = vcmask 1040384   ;;  %v194_v1 = vld [vmem:[%s706_s2 + $0x40] sm:$0x1]  ;;  %v604_v3 = vmov 0  }
   0xc   : > { %v202_v2 = vpack.c.bf16 %v195_v0, %v195_v0  ;;  %v209_v4 = vsel %vm207_vm0, 65535, %v604_v3  ;;  %v201_v5 = vpack.c.bf16 %v194_v1, %v194_v1  ;;  %v191_v6 = vld [vmem:[%s706_s2 + $0x28] sm:$0xff]  ;;  %v193_v7 = vld [vmem:[%s706_s2 + $0x38] sm:$0xff]  ;;  %248 = vmatprep.mubr.bf16.mxu0 %v604_v3  ;;  %v190_v11 = vld [vmem:[%s706_s2 + $0x20] sm:$0xff]  ;;  %s709_s13 = smov (!%p171_p3, %s532_s13), 1  ;;  %v605_v13 = vmov 0.0  }
   0xd   : > { %v200_v10 = vpack.c.bf16 %v193_v7, %v191_v6  ;;  %v192_v12 = vld [vmem:[%s706_s2 + $0x30] sm:$0xff]  ;;  %555 = vmatprep.subr.bf16.mxu1 %v605_v13  ;;  %v187_v14 = vld [vmem:[%s706_s2 + $0x8] sm:$0xff]  ;;  %v189_v15 = vld [vmem:[%s706_s2 + $0x18] sm:$0xff]  ;;  %s665_s30 = sshll.u32 %s709_s13, 3  ;;  %vm203_vm1 = vcmask 269312   ;;  %vm606_vm2 = vmmov 0  }
   0xe   : > { %v214_v8 = vand.u32 %v209_v4, %v202_v2  ;;  %v211_v9 = vand.u32 %v209_v4, %v201_v5  ;;  %v199_v16 = vpack.c.bf16 %v192_v12, %v190_v11  ;;  %s178_s6 = scalar_lea.vmem %s705_s1, %s665_s30  ;;  %v198_v17 = vpack.c.bf16 %v189_v15, %v187_v14  ;;  %v186_v18 = vld [vmem:[%s706_s2] sm:$0xff]  ;;  %v188_v19 = vld [vmem:[%s706_s2 + $0x10] sm:$0xff]  ;;  %s174_s14 = scalar_lea.vmem %s704_s0, %s665_s30  ;;  %557 = vmatprep.mubr.msk.bf16.mxu1 %vm606_vm2, %v605_v13 }
   0xf   : > { %v185_v20 = vld [vmem:[%s178_s6] sm:$0xff]  ;;  %v197_v22 = vpack.c.bf16 %v188_v19, %v186_v18  ;;  %vm416_vm3 = vcmask 236544   ;;  %s695_s20 = scalar_lea.vmem %s707_s3, %s665_s30  ;;  %vm305_vm4 = vcmask 64512   ;;  %vm357_vm5 = vcmask 130112  }
  0x10   : > { %226 = vmatprep.subr.bf16.mxu0 %v214_v8  ;;  %v258_v21 = vpack.c.bf16 %v185_v20, %v185_v20  ;;  %v184_v23 = vld [vmem:[%s174_s14] sm:$0xff]  ;;  %vm408_vm6 = vcmask 195712   ;;  %vm465_vm7 = vcmask 261312  }
  0x11   : > { %227 = vmatpush1.bf16.msra.mxu0 %v211_v9  ;;  %v196_v25 = vpack.c.bf16 %v184_v23, %v184_v23 }
  0x12   : > { %228 = vmatprep.subr.bf16.mxu0 %v200_v10  ;;  %v263_v24 = vsel %vm203_vm1, %v258_v21, 0 }
  0x13   : > { %556 = vmatpush3.bf16.xpose.msra.mxu1 %v263_v24 }
  0x14   : > { %561 = vmatprep.subr.bf16.mxu1 %v605_v13 }
  0x15   : > { %229 = vmatpush1.bf16.msra.mxu0 %v199_v16 }
  0x16   : > { %230 = vmatprep.subr.bf16.mxu0 %v198_v17 }
  0x19   : > { %231 = vmatpush1.bf16.msra.mxu0 %v197_v22 }
  0x1a   : > { %567 = vmatprep.subr.bf16.mxu0 %v605_v13 }
  0x1c   : > { %540 = vmatmul.mubr.msk.bf16.vlgmr.msra.gmra.mxu0 %vm203_vm1, %v196_v25 }
  0x1d   : > { %568 = vmatpush3.bf16.xpose.msra.mxu0 %v263_v24  ;;  %569 = vmatprep.mubr.msk.bf16.mxu0 %vm606_vm2, %v605_v13 }
  0xdc   : > { %v250_v26 = vpop.f32.mrf.mxu0 }
  0xdd   : > { %v257_v27 = vpack.c.bf16 %v250_v26, %v250_v26 }
  0xde   : > { %v252_v28 = vpop.f32.mrf.mxu0 }
  0xdf   : > { %412 = vrot.lane.b32.xlu1 %v257_v27, %s607_s15  ;;  %308 = vrot.lane.b32.xlu0 %v257_v27, %s608_s16  ;;  %v410_v30 = vpack.c.bf16 %v252_v28, %v252_v28 }
  0xe0   : > { %558 = vmatmul.mubr.msk.bf16.vlgmr.msra.gmra.mxu1 %vm203_vm1, %v257_v27  ;;  %v254_v29 = vpop.f32.mrf.mxu0 }
  0xe1   : > { %562 = vmatpush3.bf16.xpose.msra.mxu1 %v263_v24  ;;  %563 = vmatprep.mubr.msk.bf16.mxu1 %vm606_vm2, %v605_v13 }
  0xe2   : > { %v255_v31 = vpop.f32.mrf.mxu0  ;;  %573 = vmatprep.subr.bf16.mxu1 %v605_v13 }
  0xe3   : > { %359 = vrot.lane.b32.xlu0 %v257_v27, %s609_s17  ;;  %414 = vrot.lane.b32.xlu1 %v410_v30, %s607_s15 }
 0x151   : > { %v413_v32 = vpop.permute.xlu1 %412  ;;  %v309_v33 = vpop.permute.xlu0 %308 }
 0x152   : > { %564 = vmatmul.mubr.msk.bf16.vlgmr.msra.gmra.mxu1 %vm203_vm1, %v309_v33 }
 0x153   : > { %574 = vmatpush3.bf16.xpose.msra.mxu1 %v263_v24  ;;  %575 = vmatprep.mubr.msk.bf16.mxu1 %vm606_vm2, %v605_v13 }
 0x155   : > { %v360_v34 = vpop.permute.xlu0 %359  ;;  %v415_v35 = vpop.permute.xlu1 %414 }
 0x156   : > { %570 = vmatmul.mubr.msk.bf16.vlgmr.msra.gmra.mxu0 %vm203_vm1, %v360_v34  ;;  %v417_v36 = vsel %vm416_vm3, %v413_v32, %v415_v35 }
 0x15a   : > { %576 = vmatmul.mubr.msk.bf16.vlgmr.msra.gmra.mxu1 %vm203_vm1, %v417_v36 }
 0x1a0   : > { %v299_v37 = vpop.f32.mrf.mxu1 }
 0x1a1   : > { %306 = vst.msk [vmem:[%s695_s20] sm:$0xff] %vm305_vm4, %v299_v37 }
 0x1a2   : > { %v559_v38 = vpop.f32.mrf.mxu1 }
 0x1a4   : > { %v302_v39 = vpop.f32.mrf.mxu1 }
 0x1a6   : > { %v560_v40 = vpop.f32.mrf.mxu1 }
 0x212   : > { %v347_v41 = vpop.f32.mrf.mxu1 }
 0x213   : > { %354 = vrot.lane.b32.xlu0 %v347_v41, %s610_s21 }
 0x214   : > { %v565_v42 = vpop.f32.mrf.mxu1 }
 0x216   : > { %v350_v43 = vpop.f32.mrf.mxu1  ;;  %v398_v44 = vpop.f32.mrf.mxu0 }
 0x217   : > { %405 = vrot.lane.b32.xlu1 %v398_v44, %s611_s22 }
 0x218   : > { %v566_v45 = vpop.f32.mrf.mxu1  ;;  %v571_v46 = vpop.f32.mrf.mxu0 }
 0x21a   : > { %v401_v47 = vpop.f32.mrf.mxu0  ;;  %v455_v48 = vpop.f32.mrf.mxu1 }
 0x21b   : > { %462 = vrot.lane.b32.xlu0 %v455_v48, %s612_s23 }
 0x21c   : > { %v572_v49 = vpop.f32.mrf.mxu0  ;;  %v577_v50 = vpop.f32.mrf.mxu1 }
 0x21e   : > { %v458_v51 = vpop.f32.mrf.mxu1 }
 0x220   : > { %v578_v52 = vpop.f32.mrf.mxu1 }
 0x285   : > { %v355_v53 = vpop.permute.xlu0 %354 }
 0x286   : > { %358 = vst.msk [vmem:[%s695_s20] sm:$0xff] %vm357_vm5, %v355_v53 }
 0x289   : > { %v406_v54 = vpop.permute.xlu1 %405 }
 0x28a   : > { %409 = vst.msk [vmem:[%s695_s20] sm:$0xff] %vm408_vm6, %v406_v54 }
 0x28d   : > { %v463_v55 = vpop.permute.xlu0 %462 }
 0x28e   : > { %466 = vst.msk [vmem:[%s695_s20] sm:$0xff] %vm465_vm7, %v463_v55 }
 0x28f PF: > { %s13_s12 = sadd.s32 1, %s602_s12  }
 0x290   : > { %p10_p4 = scmp.ge.s32.totalorder %s13_s12, 4  }
 0x292   :  { %12 = sbr.rel (!%p10_p4) target bundleno = 1 (0x1), region = 65 }

// kernel: second_stage_forward.2
= control target key start
LH: loop header
LB: loop body
LE: loop exit
PB: predicated region body
PF: predicated region fallthrough
CT: control target
= control target key end

     0   :  { %s4240_s6 = smov 1   ;;  %s4241_s10 = smov 2   ;;  %s4926_s0 = inlined_call_operand.smem [shape: u32[41], index: -1, kind: input, shape index: {}] }
   0x1   :  { %s4319_s5 = sld [smem:[%s4926_s0]]   ;;  %s4242_s14 = smov 3  }
   0x2   :  { %s4324_s9 = sld [smem:[%s4926_s0 + %s4240_s6]]   ;;  %s4243_s18 = smov 4  }
   0x3   :  { %s4329_s13 = sld [smem:[%s4926_s0 + %s4241_s10]]   ;;  %s4244_s22 = smov 5  }
   0x4   :  { %s4334_s17 = sld [smem:[%s4926_s0 + %s4242_s14]]   ;;  %s4245_s26 = smov 6  }
   0x5   :  { %s4339_s21 = sld [smem:[%s4926_s0 + %s4243_s18]]   ;;  %s4246_s30 = smov 7  }
   0x6   :  { %s4344_s25 = sld [smem:[%s4926_s0 + %s4244_s22]]   ;;  %s4247_s4 = smov 8  }
   0x7   :  { %4939 = sst [smem:[#allocation50_spill]] %s4319_s5  ;;  %s4248_s10 = smov 9  }
   0x8   :  { %4940 = sst [smem:[#allocation51_spill]] %s4324_s9  ;;  %s4249_s15 = smov 10  }
   0x9   :  { %4941 = sst [smem:[#allocation52_spill]] %s4329_s13  ;;  %s4250_s20 = smov 11  }
   0xa   :  { %4942 = sst [smem:[#allocation53_spill]] %s4334_s17  ;;  %s4252_s1 = smov 13  }
   0xb   :  { %4943 = sst [smem:[#allocation54_spill]] %s4339_s21  ;;  %s4253_s7 = smov 14  }
   0xc   :  { %4944 = sst [smem:[#allocation55_spill]] %s4344_s25  ;;  %s4255_s22 = smov 16  }
   0xd   :  { %s4349_s29 = sld [smem:[%s4926_s0 + %s4245_s26]]   ;;  %s4251_s26 = smov 12  }
   0xe   :  { %s4354_s3 = sld [smem:[%s4926_s0 + %s4246_s30]]   ;;  %s4256_s28 = smov 17  }
   0xf   :  { %s4359_s8 = sld [smem:[%s4926_s0 + %s4247_s4]]   ;;  %s4279_s23 = smov 40  }
  0x10   :  { %s4364_s14 = sld [smem:[%s4926_s0 + %s4248_s10]]  }
  0x11   :  { %s4369_s19 = sld [smem:[%s4926_s0 + %s4249_s15]]   ;;  %s4254_s15 = smov 15  }
  0x12   :  { %s4374_s24 = sld [smem:[%s4926_s0 + %s4250_s20]]  }
  0x13   :  { %4945 = sst [smem:[#allocation56_spill]] %s4349_s29 }
  0x14   :  { %4946 = sst [smem:[#allocation57_spill]] %s4354_s3 }
  0x15   :  { %4947 = sst [smem:[#allocation58_spill]] %s4359_s8 }
  0x16   :  { %4948 = sst [smem:[#allocation59_spill]] %s4364_s14 }
  0x17   :  { %4949 = sst [smem:[#allocation60_spill]] %s4369_s19 }
  0x18   :  { %4950 = sst [smem:[#allocation61_spill]] %s4374_s24 }
  0x19   :  { %s4379_s30 = sld [smem:[%s4926_s0 + %s4251_s26]]  }
  0x1a   :  { %s4384_s6 = sld [smem:[%s4926_s0 + %s4252_s1]]  }
  0x1b   :  { %s4389_s12 = sld [smem:[%s4926_s0 + %s4253_s7]]   ;;  %s4257_s7 = smov 18  }
  0x1c   :  { %s4394_s20 = sld [smem:[%s4926_s0 + %s4254_s15]]   ;;  %s4258_s15 = smov 19  }
  0x1d   :  { %s4399_s27 = sld [smem:[%s4926_s0 + %s4255_s22]]   ;;  %s4259_s22 = smov 20  }
  0x1e   :  { %s4404_s4 = sld [smem:[%s4926_s0 + %s4256_s28]]   ;;  %s4260_s28 = smov 21  }
  0x1f   :  { %s4414_s24 = sld [smem:[%s4926_s0 + %s4258_s15]]   ;;  %s4262_s15 = smov 23  }
  0x20   :  { %4951 = sst [smem:[#allocation62_spill]] %s4384_s6 }
  0x21   :  { %s4409_s6 = sld [smem:[%s4926_s0 + %s4257_s7]]   ;;  %s4261_s7 = smov 22  }
  0x22   :  { %s4419_s3 = sld [smem:[%s4926_s0 + %s4259_s22]]   ;;  %s4263_s22 = smov 24  }
  0x23   :  { %s4424_s14 = sld [smem:[%s4926_s0 + %s4260_s28]]   ;;  %s4264_s28 = smov 25  }
  0x24   :  { %4952 = sst [smem:[#allocation63_spill]] %s4404_s4 }
  0x25   :  { %4954 = sst [smem:[#allocation65_spill]] %s4414_s24 }
  0x26   :  { %s4429_s19 = sld [smem:[%s4926_s0 + %s4261_s7]]   ;;  %s4265_s7 = smov 26  }
  0x27   :  { %4953 = sst [smem:[#allocation64_spill]] %s4409_s6 }
  0x28   :  { %4955 = sst [smem:[#allocation66_spill]] %s4419_s3 }
  0x29   :  { %4956 = sst [smem:[#allocation67_spill]] %s4424_s14 }
  0x2a   :  { %s4434_s25 = sld [smem:[%s4926_s0 + %s4262_s15]]   ;;  %s4266_s15 = smov 27  }
  0x2b   :  { %s4439_s9 = sld [smem:[%s4926_s0 + %s4263_s22]]   ;;  %s4267_s22 = smov 28  }
  0x2c   :  { %s4444_s8 = sld [smem:[%s4926_s0 + %s4264_s28]]   ;;  %s4268_s28 = smov 29  }
  0x2d   :  { %s4449_s17 = sld [smem:[%s4926_s0 + %s4265_s7]]   ;;  %s4269_s7 = smov 30  }
  0x2e   :  { %s4454_s29 = sld [smem:[%s4926_s0 + %s4266_s15]]   ;;  %s4270_s15 = smov 31  }
  0x2f   :  { %s4464_s21 = sld [smem:[%s4926_s0 + %s4268_s28]]   ;;  %s4272_s28 = smov 33  }
  0x30   :  { %4957 = sst [smem:[#allocation68_spill]] %s4434_s25 }
  0x31   :  { %4958 = sst [smem:[#allocation69_spill]] %s4439_s9 }
  0x32   :  { %s4459_s9 = sld [smem:[%s4926_s0 + %s4267_s22]]   ;;  %s4271_s22 = smov 32  }
  0x33   :  { %4959 = sst [smem:[#allocation70_spill]] %s4449_s17 }
  0x34   :  { %s4469_s5 = sld [smem:[%s4926_s0 + %s4269_s7]]   ;;  %s4273_s7 = smov 34  }
  0x35   :  { %s4474_s13 = sld [smem:[%s4926_s0 + %s4270_s15]]   ;;  %s4274_s15 = smov 35  }
  0x36   :  { %s4484_s17 = sld [smem:[%s4926_s0 + %s4272_s28]]   ;;  %s4276_s28 = smov 37  }
  0x37   :  { %s4494_s25 = sld [smem:[%s4926_s0 + %s4274_s15]]   ;;  %s4278_s15 = smov 39  }
  0x38   :  { %4960 = sst [smem:[#allocation71_spill]] %s4459_s9 }
  0x39   :  { %s4479_s9 = sld [smem:[%s4926_s0 + %s4271_s22]]   ;;  %s4275_s22 = smov 36  }
  0x3a   :  { %4961 = sst [smem:[#allocation72_spill]] %s4469_s5 }
  0x3b   :  { %s4489_s5 = sld [smem:[%s4926_s0 + %s4273_s7]]   ;;  %s4277_s7 = smov 38  }
  0x3c   :  { %s4504_s14 = sld [smem:[%s4926_s0 + %s4276_s28]]  }
  0x3d   :  { %s2984_s24 = sld [smem:[%s4926_s0 + %s4278_s15]]  }
  0x3f   :  { %4962 = sst [smem:[#allocation73_spill]] %s4479_s9 }
  0x40   :  { %s4499_s9 = sld [smem:[%s4926_s0 + %s4275_s22]]  }
  0x41   :  { %4963 = sst [smem:[#allocation74_spill]] %s4489_s5 }
  0x42   :  { %s4509_s5 = sld [smem:[%s4926_s0 + %s4277_s7]]  }
  0x43   :  { %v86_v0 = vstv %s2984_s24 }
  0x44   :  { %87 = vst [vmem:[#allocation2] sm:$0x1] %v86_v0 }
  0x46   :  { %4964 = sst [smem:[#allocation75_spill]] %s4499_s9 }
  0x47   :  { %s4517_s9 = sld [smem:[%s4926_s0 + %s4279_s23]]  }
  0x48   :  { %88 = vsyncpa [#allocation4], 0 }
  0x49   :  { %89 = vsyncpa [#allocation6], 0 }
  0x4a   :  { %90 = vsyncpa [#allocation9], 0 }
  0x4b   :  { %91 = vsyncpa [#allocation12], 0 }
  0x4c   :  { %92 = vsyncpa [#allocation15], 0 }
  0x4d   :  { %93 = vsyncpa [#allocation18], 0 }
  0x4e   :  { %94 = vsyncpa [#allocation21], 0 }
  0x4f   :  { %95 = vsyncpa [#allocation24], 0 }
  0x50   :  { %96 = vsyncpa [#allocation27], 0 }
  0x51   :  { %97 = vsyncpa [#allocation30], 0 }
  0x52   :  { %98 = vsyncpa [#allocation33], 0 }
  0x53   :  { %99 = vsyncpa [#allocation36], 0  ;;  %s4519_s28 = smov 0  }
  0x54 LB: > { %s4525_s0 = sadd.s32 4294967295, %s4238_s28   ;;  %p2988_p0 = scmp.ge.s32.totalorder %s4238_s28, 1  ;;  %s4238_s28 = sphi %s4519_s28, %s105_s28  }
  0x55   : > { %p986_p1 = scmp.lt.s32.totalorder %s4238_s28, 3  ;;  %p4937_p2 = scmp.eq.s32.totalorder %s4525_s0, 0 }
  0x56   : > { %s4280_s1 = smov [#allocation5]   ;;  %s4281_s7 = smov [#allocation8]  }
  0x57   : > { %p4530_p3 = pnand %p2988_p0, %p986_p1  ;;  %s1044_s2 = sshll.u32 %s4280_s1, 4  ;;  %s1045_s2 = int_to_ptr.vmem [resolvable:$true] %s1044_s2 }
  0x58   : > { %s1068_s10 = sshll.u32 %s4281_s7, 4  ;;  %s4282_s15 = smov [#allocation11]   ;;  %s4536_s10 = int_to_ptr.vmem [resolvable:$true] %s1068_s10 }
  0x59   : > { %s4965_s24 = scalar_select %p4530_p3, 1, 0 }
  0x5a   : > { %p3383_p4 = pneg %p4530_p3  ;;  %s1092_s16 = sshll.u32 %s4282_s15, 4  ;;  %s4544_s16 = int_to_ptr.vmem [resolvable:$true] %s1092_s16 }
  0x5b   : > { %s4283_s18 = smov [#allocation14]   ;;  %s3597_s26 = scalar_lea.vmem %s1045_s2, 512 }
  0x5c   : > { %p4540_p5 = pnand %p4937_p2, %p3383_p4  ;;  %s4546_s23 = sshll.u32 %s4283_s18, 4  ;;  %s1117_s23 = int_to_ptr.vmem [resolvable:$true] %s4546_s23 }
  0x5d   : > { %p3598_p7 = scmp.ne.s32.totalorder %s1045_s2, %s3597_s26  ;;  %p3605_p10 = scmp.lt.s32.totalorder %s1045_s2, %s1045_s2 }
  0x5e   : > { %p4550_p6 = pneg %p4540_p5  ;;  %p3606_p11 = scmp.lt.s32.totalorder %s3597_s26, %s3597_s26 }
  0x60   : > { %p3600_p8 = pnand %p3598_p7, %p4550_p6  ;;  %p3607_p12 = por %p3606_p11, %p3605_p10 }
  0x62   : > { %p3601_p9 = pneg %p3600_p8 }
  0x64   : > { %p3608_p13 = pnand %p3607_p12, %p3601_p9 }
  0x66   : > { %3611 = shalt.err (!%p3608_p13)
}
  0x67   : > { %s4933_s1 = smov 128   ;;  %s4935_s7 = smov 8  }
  0x68   : > { %3389 = dma.hbm_to_vmem [thread:$0]  (!%p4540_p5), %s4389_s12, 512, %s1045_s2, [#allocation6], %s4933_s1, %s4933_s1, %s4935_s7  }
  0x69   : > { %s3623_s15 = scalar_lea.vmem %s4536_s10, 512  ;;  %p3631_p7 = scmp.lt.s32.totalorder %s4536_s10, %s4536_s10 }
  0x6a   : > { %p3624_p0 = scmp.ne.s32.totalorder %s4536_s10, %s3623_s15  ;;  %p3632_p8 = scmp.lt.s32.totalorder %s3623_s15, %s3623_s15 }
  0x6c   : > { %p3626_p1 = pnand %p3624_p0, %p4550_p6  ;;  %p3633_p9 = por %p3632_p8, %p3631_p7 }
  0x6e   : > { %p3627_p4 = pneg %p3626_p1 }
  0x70   : > { %p3634_p10 = pnand %p3633_p9, %p3627_p4 }
  0x72   : > { %3637 = shalt.err (!%p3634_p10)
}
  0x73   : > { %3395 = dma.hbm_to_vmem [thread:$0]  (!%p4540_p5), %s4399_s27, 512, %s4536_s10, [#allocation9], %s4933_s1, %s4933_s1, %s4935_s7  }
  0x74   : > { %s3649_s2 = scalar_lea.vmem %s4544_s16, 512  ;;  %p3657_p0 = scmp.lt.s32.totalorder %s4544_s16, %s4544_s16 }
  0x75   : > { %p3650_p11 = scmp.ne.s32.totalorder %s4544_s16, %s3649_s2  ;;  %p3658_p1 = scmp.lt.s32.totalorder %s3649_s2, %s3649_s2 }
  0x77   : > { %p3652_p12 = pnand %p3650_p11, %p4550_p6  ;;  %p3659_p4 = por %p3658_p1, %p3657_p0 }
  0x79   : > { %p3653_p13 = pneg %p3652_p12 }
  0x7b   : > { %p3660_p7 = pnand %p3659_p4, %p3653_p13 }
  0x7d   : > { %3663 = shalt.err (!%p3660_p7)
}
  0x7e   : > { %s4968_s6 = sld [smem:[#allocation64_spill]]  ;;  %s3675_s10 = scalar_lea.vmem %s1117_s23, 512 }
  0x7f   : > { %p3676_p8 = scmp.ne.s32.totalorder %s1117_s23, %s3675_s10  ;;  %p3683_p11 = scmp.lt.s32.totalorder %s1117_s23, %s1117_s23 }
  0x80   : > { %p3684_p12 = scmp.lt.s32.totalorder %s3675_s10, %s3675_s10 }
  0x81   : > { %p3678_p9 = pnand %p3676_p8, %p4550_p6 }
  0x82   : > { %p3685_p13 = por %p3684_p12, %p3683_p11 }
  0x83   : > { %p3679_p10 = pneg %p3678_p9 }
  0x84   : > { %3401 = dma.hbm_to_vmem [thread:$0]  (!%p4540_p5), %s4968_s6, 512, %s4544_s16, [#allocation12], %s4933_s1, %s4933_s1, %s4935_s7  }
  0x85   : > { %p3686_p0 = pnand %p3685_p13, %p3679_p10 }
  0x87   : > { %3689 = shalt.err (!%p3686_p0)
}
  0x88   : > { %s4969_s3 = sld [smem:[#allocation66_spill]]  ;;  %s4286_s16 = smov [#allocation17]  }
  0x89   : > { %s1140_s18 = sshll.u32 %s4286_s16, 4  ;;  %s4287_s26 = smov [#allocation20]   ;;  %s1141_s18 = int_to_ptr.vmem [resolvable:$true] %s1140_s18 }
  0x8a   : > { %s1168_s15 = sshll.u32 %s4287_s26, 4  ;;  %s3701_s2 = scalar_lea.vmem %s1141_s18, 512  ;;  %s1169_s15 = int_to_ptr.vmem [resolvable:$true] %s1168_s15 }
  0x8b   : > { %p3702_p1 = scmp.ne.s32.totalorder %s1141_s18, %s3701_s2  ;;  %p3709_p8 = scmp.lt.s32.totalorder %s1141_s18, %s1141_s18 }
  0x8c   : > { %p3710_p9 = scmp.lt.s32.totalorder %s3701_s2, %s3701_s2 }
  0x8d   : > { %p3704_p4 = pnand %p3702_p1, %p4550_p6 }
  0x8e   : > { %3407 = dma.hbm_to_vmem [thread:$0]  (!%p4540_p5), %s4969_s3, 512, %s1117_s23, [#allocation15], %s4933_s1, %s4933_s1, %s4935_s7  }
  0x8f   : > { %p3705_p7 = pneg %p3704_p4  ;;  %p3711_p10 = por %p3710_p9, %p3709_p8 }
  0x91   : > { %p3712_p11 = pnand %p3711_p10, %p3705_p7 }
  0x93   : > { %3715 = shalt.err (!%p3712_p11)
}
  0x94   : > { %3413 = dma.hbm_to_vmem [thread:$0]  (!%p4540_p5), %s4429_s19, 512, %s1141_s18, [#allocation18], %s4933_s1, %s4933_s1, %s4935_s7  }
  0x95   : > { %s3727_s23 = scalar_lea.vmem %s1169_s15, 16  ;;  %s3734_s10 = scalar_lea.vmem %s1169_s15, 32 }
  0x96   : > { %p3728_p12 = scmp.ne.s32.totalorder %s1169_s15, %s3727_s23  ;;  %p3735_p1 = scmp.lt.s32.totalorder %s1169_s15, %s1169_s15 }
  0x97   : > { %p3736_p4 = scmp.lt.s32.totalorder %s3734_s10, %s3727_s23 }
  0x98   : > { %p3730_p13 = pnand %p3728_p12, %p4550_p6 }
  0x99   : > { %p3737_p8 = por %p3736_p4, %p3735_p1 }
  0x9a   : > { %p3731_p0 = pneg %p3730_p13 }
  0x9c   : > { %p3738_p7 = pnand %p3737_p8, %p3731_p0 }
  0x9e   : > { %3741 = shalt.err (!%p3738_p7)
}
  0x9f   : > { %3419 = dma.hbm_to_vmem [thread:$0]  (!%p4540_p5), %s4444_s8, 16, %s1169_s15, [#allocation21]  }
  0xa0   : > { %s4288_s16 = smov [#allocation23]   ;;  %s4289_s18 = smov [#allocation26]  }
  0xa1   : > { %s1192_s26 = sshll.u32 %s4288_s16, 4  ;;  %s1216_s2 = sshll.u32 %s4289_s18, 4  ;;  %s1193_s26 = int_to_ptr.vmem [resolvable:$true] %s1192_s26  ;;  %s1217_s2 = int_to_ptr.vmem [resolvable:$true] %s1216_s2 }
  0xa2   : > { %s3753_s1 = scalar_lea.vmem %s1193_s26, 16  ;;  %s3760_s7 = scalar_lea.vmem %s1193_s26, 32 }
  0xa3   : > { %p3754_p9 = scmp.ne.s32.totalorder %s1193_s26, %s3753_s1  ;;  %p3761_p12 = scmp.lt.s32.totalorder %s1193_s26, %s1193_s26 }
  0xa4   : > { %p3762_p13 = scmp.lt.s32.totalorder %s3760_s7, %s3753_s1 }
  0xa5   : > { %p3756_p10 = pnand %p3754_p9, %p4550_p6 }
  0xa6   : > { %p3763_p0 = por %p3762_p13, %p3761_p12 }
  0xa7   : > { %p3757_p11 = pneg %p3756_p10 }
  0xa9   : > { %p3764_p1 = pnand %p3763_p0, %p3757_p11 }
  0xab   : > { %3767 = shalt.err (!%p3764_p1)
}
  0xac   : > { %3425 = dma.hbm_to_vmem [thread:$0]  (!%p4540_p5), %s4454_s29, 16, %s1193_s26, [#allocation24]  }
  0xad   : > { %s3779_s15 = scalar_lea.vmem %s1217_s2, 16  ;;  %s3786_s23 = scalar_lea.vmem %s1217_s2, 32 }
  0xae   : > { %p3780_p4 = scmp.ne.s32.totalorder %s1217_s2, %s3779_s15  ;;  %p3787_p9 = scmp.lt.s32.totalorder %s1217_s2, %s1217_s2 }
  0xaf   : > { %p3788_p10 = scmp.lt.s32.totalorder %s3786_s23, %s3779_s15 }
  0xb0   : > { %p3782_p8 = pnand %p3780_p4, %p4550_p6 }
  0xb1   : > { %p3789_p2 = por %p3788_p10, %p3787_p9 }
  0xb2   : > { %p3783_p7 = pneg %p3782_p8 }
  0xb4   : > { %p3790_p3 = pnand %p3789_p2, %p3783_p7 }
  0xb6   : > { %3793 = shalt.err (!%p3790_p3)
}
  0xb7   : > { %3431 = dma.hbm_to_vmem [thread:$0]  (!%p4540_p5), %s4464_s21, 16, %s1217_s2, [#allocation27]  }
  0xb8   : > { %s4290_s1 = smov [#allocation29]   ;;  %s4291_s10 = smov [#allocation32]  }
  0xb9   : > { %s1240_s7 = sshll.u32 %s4290_s1, 4  ;;  %s1264_s16 = sshll.u32 %s4291_s10, 4  ;;  %s1241_s7 = int_to_ptr.vmem [resolvable:$true] %s1240_s7  ;;  %s1265_s16 = int_to_ptr.vmem [resolvable:$true] %s1264_s16 }
  0xba   : > { %s3805_s26 = scalar_lea.vmem %s1241_s7, 16  ;;  %s3812_s18 = scalar_lea.vmem %s1241_s7, 32 }
  0xbb   : > { %p3806_p11 = scmp.ne.s32.totalorder %s1241_s7, %s3805_s26  ;;  %p3813_p0 = scmp.lt.s32.totalorder %s1241_s7, %s1241_s7 }
  0xbc   : > { %p3814_p1 = scmp.lt.s32.totalorder %s3812_s18, %s3805_s26 }
  0xbd   : > { %p3808_p12 = pnand %p3806_p11, %p4550_p6 }
  0xbe   : > { %p3815_p2 = por %p3814_p1, %p3813_p0 }
  0xbf   : > { %p3809_p13 = pneg %p3808_p12 }
  0xc1   : > { %p3816_p3 = pnand %p3815_p2, %p3809_p13 }
  0xc3   : > { %3819 = shalt.err (!%p3816_p3)
}
  0xc4   : > { %3437 = dma.hbm_to_vmem [thread:$0]  (!%p4540_p5), %s4474_s13, 16, %s1241_s7, [#allocation30]  }
  0xc5   : > { %s3831_s2 = scalar_lea.vmem %s1265_s16, 16  ;;  %s3838_s15 = scalar_lea.vmem %s1265_s16, 32 }
  0xc6   : > { %p3832_p4 = scmp.ne.s32.totalorder %s1265_s16, %s3831_s2  ;;  %p3839_p9 = scmp.lt.s32.totalorder %s1265_s16, %s1265_s16 }
  0xc7   : > { %p3840_p10 = scmp.lt.s32.totalorder %s3838_s15, %s3831_s2 }
  0xc8   : > { %p3834_p8 = pnand %p3832_p4, %p4550_p6 }
  0xc9   : > { %p3841_p11 = por %p3840_p10, %p3839_p9 }
  0xca   : > { %p3835_p7 = pneg %p3834_p8 }
  0xcc   : > { %p3842_p12 = pnand %p3841_p11, %p3835_p7 }
  0xce   : > { %3845 = shalt.err (!%p3842_p12)
}
  0xcf   : > { %3443 = dma.hbm_to_vmem [thread:$0]  (!%p4540_p5), %s4484_s17, 16, %s1265_s16, [#allocation33]  }
  0xd0   : > { %s4292_s23 = smov [#allocation35]   ;;  %s4293_s7 = smov [#allocation3]  }
  0xd1   : > { %s1288_s1 = sshll.u32 %s4292_s23, 4  ;;  %s1028_s10 = sshll.u32 %s4293_s7, 4  ;;  %s1289_s1 = int_to_ptr.vmem [resolvable:$true] %s1288_s1  ;;  %s1029_s10 = int_to_ptr.vmem [resolvable:$true] %s1028_s10 }
  0xd2   : > { %s3857_s26 = scalar_lea.vmem %s1289_s1, 16  ;;  %s3864_s18 = scalar_lea.vmem %s1289_s1, 32 }
  0xd3   : > { %p3858_p13 = scmp.ne.s32.totalorder %s1289_s1, %s3857_s26  ;;  %p3865_p2 = scmp.lt.s32.totalorder %s1289_s1, %s1289_s1 }
  0xd4   : > { %p3866_p3 = scmp.lt.s32.totalorder %s3864_s18, %s3857_s26 }
  0xd5   : > { %p3860_p0 = pnand %p3858_p13, %p4550_p6 }
  0xd6   : > { %p3867_p4 = por %p3866_p3, %p3865_p2 }
  0xd7   : > { %p3861_p1 = pneg %p3860_p0 }
  0xd9   : > { %p3868_p8 = pnand %p3867_p4, %p3861_p1 }
  0xdb   : > { %3871 = shalt.err (!%p3868_p8)
}
  0xdc   : > { %3449 = dma.hbm_to_vmem [thread:$0]  (!%p4540_p5), %s4494_s25, 16, %s1289_s1, [#allocation36]  }
  0xdd   : > { %s3883_s16 = scalar_lea.vmem %s1029_s10, 512  ;;  %p3891_p11 = scmp.lt.s32.totalorder %s1029_s10, %s1029_s10 }
  0xde   : > { %p3884_p7 = scmp.ne.s32.totalorder %s1029_s10, %s3883_s16  ;;  %p3892_p12 = scmp.lt.s32.totalorder %s3883_s16, %s3883_s16 }
  0xe0   : > { %p3886_p9 = pnand %p3884_p7, %p4550_p6  ;;  %p3893_p13 = por %p3892_p12, %p3891_p11 }
  0xe2   : > { %p3887_p10 = pneg %p3886_p9 }
  0xe4   : > { %p3894_p0 = pnand %p3893_p13, %p3887_p10 }
  0xe6   : > { %3897 = shalt.err (!%p3894_p0)
}
  0xe7   : > { %s4970_s2 = smov 8   ;;  %s4971_s15 = smov 128  }
  0xe8   : > { %3386 = dma.hbm_to_vmem [thread:$0]  (!%p4540_p5), %s4379_s30, 512, %s1029_s10, [#allocation4], %s4971_s15, %s4971_s15, %s4970_s2  }
  0xe9   : > { %s4294_s23 = smov [#allocation7]   ;;  %s4295_s7 = smov [#allocation10]  }
  0xea   : > { %s1058_s1 = sshll.u32 %s4294_s23, 4  ;;  %s1082_s26 = sshll.u32 %s4295_s7, 4  ;;  %s1059_s1 = int_to_ptr.vmem [resolvable:$true] %s1058_s1  ;;  %s1083_s26 = int_to_ptr.vmem [resolvable:$true] %s1082_s26 }
  0xeb   : > { %s3909_s18 = scalar_lea.vmem %s1059_s1, 16  ;;  %s3916_s16 = scalar_lea.vmem %s1059_s1, 32 }
  0xec   : > { %p3910_p1 = scmp.ne.s32.totalorder %s1059_s1, %s3909_s18  ;;  %p3917_p4 = scmp.lt.s32.totalorder %s1059_s1, %s1059_s1 }
  0xed   : > { %p3918_p8 = scmp.lt.s32.totalorder %s3916_s16, %s3909_s18 }
  0xee   : > { %p3912_p2 = pnand %p3910_p1, %p4550_p6 }
  0xef   : > { %p3919_p7 = por %p3918_p8, %p3917_p4 }
  0xf0   : > { %p3913_p3 = pneg %p3912_p2 }
  0xf2   : > { %p3920_p9 = pnand %p3919_p7, %p3913_p3 }
  0xf4   : > { %3923 = shalt.err (!%p3920_p9)
}
  0xf5   : > { %3392 = dma.hbm_to_vmem [thread:$0]  (!%p4540_p5), %s4394_s20, 16, %s1059_s1, [#allocation6]  }
  0xf6   : > { %s3935_s10 = scalar_lea.vmem %s1083_s26, 16  ;;  %s3942_s23 = scalar_lea.vmem %s1083_s26, 32 }
  0xf7   : > { %p3936_p10 = scmp.ne.s32.totalorder %s1083_s26, %s3935_s10  ;;  %p3943_p13 = scmp.lt.s32.totalorder %s1083_s26, %s1083_s26 }
  0xf8   : > { %p3944_p0 = scmp.lt.s32.totalorder %s3942_s23, %s3935_s10 }
  0xf9   : > { %p3938_p11 = pnand %p3936_p10, %p4550_p6 }
  0xfa   : > { %p3945_p1 = por %p3944_p0, %p3943_p13 }
  0xfb   : > { %p3939_p12 = pneg %p3938_p11 }
  0xfd   : > { %p3946_p2 = pnand %p3945_p1, %p3939_p12 }
  0xff   : > { %3949 = shalt.err (!%p3946_p2)
}
 0x100   : > { %s4972_s4 = sld [smem:[#allocation63_spill]]  ;;  %s4296_s7 = smov [#allocation13]  }
 0x101   : > { %s1106_s18 = sshll.u32 %s4296_s7, 4  ;;  %s4297_s1 = smov [#allocation16]   ;;  %s1107_s18 = int_to_ptr.vmem [resolvable:$true] %s1106_s18 }
 0x102   : > { %s1130_s16 = sshll.u32 %s4297_s1, 4  ;;  %s3961_s3 = scalar_lea.vmem %s1107_s18, 16  ;;  %s1131_s16 = int_to_ptr.vmem [resolvable:$true] %s1130_s16 }
 0x103   : > { %p3962_p3 = scmp.ne.s32.totalorder %s1107_s18, %s3961_s3  ;;  %s3968_s6 = scalar_lea.vmem %s1107_s18, 32 }
 0x104   : > { %p3969_p7 = scmp.lt.s32.totalorder %s1107_s18, %s1107_s18  ;;  %p3970_p9 = scmp.lt.s32.totalorder %s3968_s6, %s3961_s3 }
 0x105   : > { %p3964_p4 = pnand %p3962_p3, %p4550_p6 }
 0x106   : > { %3398 = dma.hbm_to_vmem [thread:$0]  (!%p4540_p5), %s4972_s4, 16, %s1083_s26, [#allocation9]  }
 0x107   : > { %p3965_p8 = pneg %p3964_p4  ;;  %p3971_p10 = por %p3970_p9, %p3969_p7 }
 0x109   : > { %p3972_p11 = pnand %p3971_p10, %p3965_p8 }
 0x10b   : > { %3975 = shalt.err (!%p3972_p11)
}
 0x10c   : > { %s4973_s10 = sld [smem:[#allocation65_spill]]  ;;  %s3987_s26 = scalar_lea.vmem %s1131_s16, 16 }
 0x10d   : > { %p3988_p12 = scmp.ne.s32.totalorder %s1131_s16, %s3987_s26  ;;  %s3994_s23 = scalar_lea.vmem %s1131_s16, 32 }
 0x10e   : > { %p3995_p1 = scmp.lt.s32.totalorder %s1131_s16, %s1131_s16  ;;  %p3996_p2 = scmp.lt.s32.totalorder %s3994_s23, %s3987_s26 }
 0x10f   : > { %p3990_p13 = pnand %p3988_p12, %p4550_p6 }
 0x110   : > { %p3997_p3 = por %p3996_p2, %p3995_p1 }
 0x111   : > { %p3991_p0 = pneg %p3990_p13 }
 0x112   : > { %3404 = dma.hbm_to_vmem [thread:$0]  (!%p4540_p5), %s4973_s10, 16, %s1107_s18, [#allocation12]  }
 0x113   : > { %p3998_p4 = pnand %p3997_p3, %p3991_p0 }
 0x115   : > { %4001 = shalt.err (!%p3998_p4)
}
 0x116   : > { %s4974_s3 = sld [smem:[#allocation67_spill]]  ;;  %s4298_s6 = smov [#allocation19]  }
 0x117   : > { %s1154_s7 = sshll.u32 %s4298_s6, 4  ;;  %s4299_s18 = smov [#allocation22]   ;;  %s1155_s7 = int_to_ptr.vmem [resolvable:$true] %s1154_s7 }
 0x118   : > { %s1178_s1 = sshll.u32 %s4299_s18, 4  ;;  %s4013_s10 = scalar_lea.vmem %s1155_s7, 16  ;;  %s1179_s1 = int_to_ptr.vmem [resolvable:$true] %s1178_s1 }
 0x119   : > { %p4014_p8 = scmp.ne.s32.totalorder %s1155_s7, %s4013_s10  ;;  %s4020_s4 = scalar_lea.vmem %s1155_s7, 32 }
 0x11a   : > { %p4021_p10 = scmp.lt.s32.totalorder %s1155_s7, %s1155_s7  ;;  %p4022_p11 = scmp.lt.s32.totalorder %s4020_s4, %s4013_s10 }
 0x11b   : > { %p4016_p7 = pnand %p4014_p8, %p4550_p6 }
 0x11c   : > { %3410 = dma.hbm_to_vmem [thread:$0]  (!%p4540_p5), %s4974_s3, 16, %s1131_s16, [#allocation15]  }
 0x11d   : > { %p4017_p9 = pneg %p4016_p7  ;;  %p4023_p12 = por %p4022_p11, %p4021_p10 }
 0x11f   : > { %p4024_p13 = pnand %p4023_p12, %p4017_p9 }
 0x121   : > { %4027 = shalt.err (!%p4024_p13)
}
 0x122   : > { %s4975_s26 = sld [smem:[#allocation68_spill]]  ;;  %s4039_s16 = scalar_lea.vmem %s1179_s1, 512 }
 0x123   : > { %p4040_p0 = scmp.ne.s32.totalorder %s1179_s1, %s4039_s16  ;;  %p4047_p3 = scmp.lt.s32.totalorder %s1179_s1, %s1179_s1 }
 0x124   : > { %p4048_p4 = scmp.lt.s32.totalorder %s4039_s16, %s4039_s16 }
 0x125   : > { %p4042_p1 = pnand %p4040_p0, %p4550_p6 }
 0x126   : > { %p4049_p8 = por %p4048_p4, %p4047_p3 }
 0x127   : > { %p4043_p2 = pneg %p4042_p1 }
 0x128   : > { %3416 = dma.hbm_to_vmem [thread:$0]  (!%p4540_p5), %s4975_s26, 16, %s1155_s7, [#allocation18]  }
 0x129   : > { %p4050_p7 = pnand %p4049_p8, %p4043_p2 }
 0x12b   : > { %4053 = shalt.err (!%p4050_p7)
}
 0x12c   : > { %s4976_s4 = sld [smem:[#allocation70_spill]]  ;;  %s4300_s23 = smov [#allocation25]  }
 0x12d   : > { %s1202_s3 = sshll.u32 %s4300_s23, 4  ;;  %s4301_s6 = smov [#allocation28]   ;;  %s1203_s3 = int_to_ptr.vmem [resolvable:$true] %s1202_s3 }
 0x12e   : > { %s1226_s7 = sshll.u32 %s4301_s6, 4  ;;  %s4065_s18 = scalar_lea.vmem %s1203_s3, 512  ;;  %s1227_s7 = int_to_ptr.vmem [resolvable:$true] %s1226_s7 }
 0x12f   : > { %p4066_p9 = scmp.ne.s32.totalorder %s1203_s3, %s4065_s18  ;;  %p4073_p12 = scmp.lt.s32.totalorder %s1203_s3, %s1203_s3 }
 0x130   : > { %p4074_p13 = scmp.lt.s32.totalorder %s4065_s18, %s4065_s18 }
 0x131   : > { %p4068_p10 = pnand %p4066_p9, %p4550_p6 }
 0x132   : > { %3422 = dma.hbm_to_vmem [thread:$0]  (!%p4540_p5), %s4976_s4, 512, %s1179_s1, [#allocation21], %s4971_s15, %s4971_s15, %s4970_s2  }
 0x133   : > { %p4069_p11 = pneg %p4068_p10  ;;  %p4075_p0 = por %p4074_p13, %p4073_p12 }
 0x135   : > { %p4076_p1 = pnand %p4075_p0, %p4069_p11 }
 0x137   : > { %4079 = shalt.err (!%p4076_p1)
}
 0x138   : > { %s4977_s1 = sld [smem:[#allocation71_spill]]  ;;  %s4091_s10 = scalar_lea.vmem %s1227_s7, 512 }
 0x139   : > { %p4092_p2 = scmp.ne.s32.totalorder %s1227_s7, %s4091_s10  ;;  %p4099_p8 = scmp.lt.s32.totalorder %s1227_s7, %s1227_s7 }
 0x13a   : > { %p4100_p7 = scmp.lt.s32.totalorder %s4091_s10, %s4091_s10 }
 0x13b   : > { %p4094_p3 = pnand %p4092_p2, %p4550_p6 }
 0x13c   : > { %p4101_p9 = por %p4100_p7, %p4099_p8 }
 0x13d   : > { %p4095_p4 = pneg %p4094_p3 }
 0x13e   : > { %3428 = dma.hbm_to_vmem [thread:$0]  (!%p4540_p5), %s4977_s1, 512, %s1203_s3, [#allocation24], %s4971_s15, %s4971_s15, %s4970_s2  }
 0x13f   : > { %p4102_p10 = pnand %p4101_p9, %p4095_p4 }
 0x141   : > { %4105 = shalt.err (!%p4102_p10)
}
 0x142   : > { %s4978_s26 = sld [smem:[#allocation72_spill]]  ;;  %s4302_s16 = smov [#allocation31]  }
 0x143   : > { %s1250_s4 = sshll.u32 %s4302_s16, 4  ;;  %s4303_s23 = smov [#allocation34]   ;;  %s1251_s4 = int_to_ptr.vmem [resolvable:$true] %s1250_s4 }
 0x144   : > { %s1274_s3 = sshll.u32 %s4303_s23, 4  ;;  %s4117_s6 = scalar_lea.vmem %s1251_s4, 512  ;;  %s1275_s3 = int_to_ptr.vmem [resolvable:$true] %s1274_s3 }
 0x145   : > { %p4118_p11 = scmp.ne.s32.totalorder %s1251_s4, %s4117_s6  ;;  %p4125_p0 = scmp.lt.s32.totalorder %s1251_s4, %s1251_s4 }
 0x146   : > { %p4126_p1 = scmp.lt.s32.totalorder %s4117_s6, %s4117_s6 }
 0x147   : > { %p4120_p12 = pnand %p4118_p11, %p4550_p6 }
 0x148   : > { %3434 = dma.hbm_to_vmem [thread:$0]  (!%p4540_p5), %s4978_s26, 512, %s1227_s7, [#allocation27], %s4971_s15, %s4971_s15, %s4970_s2  }
 0x149   : > { %p4121_p13 = pneg %p4120_p12  ;;  %p4127_p2 = por %p4126_p1, %p4125_p0 }
 0x14b   : > { %p4128_p3 = pnand %p4127_p2, %p4121_p13 }
 0x14d   : > { %4131 = shalt.err (!%p4128_p3)
}
 0x14e   : > { %s4979_s7 = sld [smem:[#allocation73_spill]]  ;;  %s4143_s18 = scalar_lea.vmem %s1275_s3, 512 }
 0x14f   : > { %p4144_p4 = scmp.ne.s32.totalorder %s1275_s3, %s4143_s18  ;;  %p4151_p9 = scmp.lt.s32.totalorder %s1275_s3, %s1275_s3 }
 0x150   : > { %p4152_p10 = scmp.lt.s32.totalorder %s4143_s18, %s4143_s18 }
 0x151   : > { %p4146_p8 = pnand %p4144_p4, %p4550_p6 }
 0x152   : > { %p4153_p11 = por %p4152_p10, %p4151_p9 }
 0x153   : > { %p4147_p7 = pneg %p4146_p8 }
 0x154   : > { %3440 = dma.hbm_to_vmem [thread:$0]  (!%p4540_p5), %s4979_s7, 512, %s1251_s4, [#allocation30], %s4971_s15, %s4971_s15, %s4970_s2  }
 0x155   : > { %p4154_p12 = pnand %p4153_p11, %p4147_p7 }
 0x157   : > { %4157 = shalt.err (!%p4154_p12)
}
 0x158   : > { %s4980_s1 = sld [smem:[#allocation74_spill]]  ;;  %s4304_s10 = smov [#allocation37]  }
 0x159   : > { %s1298_s26 = sshll.u32 %s4304_s10, 4  ;;  %s1299_s26 = int_to_ptr.vmem [resolvable:$true] %s1298_s26 }
 0x15a   : > { %s4169_s16 = scalar_lea.vmem %s1299_s26, 512  ;;  %p4177_p2 = scmp.lt.s32.totalorder %s1299_s26, %s1299_s26 }
 0x15b   : > { %p4170_p13 = scmp.ne.s32.totalorder %s1299_s26, %s4169_s16  ;;  %p4178_p3 = scmp.lt.s32.totalorder %s4169_s16, %s4169_s16 }
 0x15d   : > { %p4172_p0 = pnand %p4170_p13, %p4550_p6  ;;  %p4179_p4 = por %p4178_p3, %p4177_p2 }
 0x15e   : > { %3446 = dma.hbm_to_vmem [thread:$0]  (!%p4540_p5), %s4980_s1, 512, %s1275_s3, [#allocation33], %s4971_s15, %s4971_s15, %s4970_s2  }
 0x15f   : > { %p4173_p1 = pneg %p4172_p0 }
 0x161   : > { %p4180_p8 = pnand %p4179_p4, %p4173_p1 }
 0x163   : > { %4183 = shalt.err (!%p4180_p8)
}
 0x164   : > { %s4981_s4 = sld [smem:[#allocation75_spill]]  ;;  %p4982_p7 = scmp.ne.s32.totalorder %s4965_s24, 0 }
 0x165   : > { %p4983_p9 = scmp.eq.s32.totalorder (!%p4982_p7), %s4525_s0, 0 }
 0x166   : > { %1337 = sbr.rel (%p4982_p7) target bundleno = 2570 (0xa0a), region = 180 }
 0x16a   : > { %3452 = dma.hbm_to_vmem [thread:$0]  (!%p4540_p5), %s4981_s4, 512, %s1299_s26, [#allocation36], %s4971_s15, %s4971_s15, %s4970_s2  }
 0x16b   : > { %4189 = dma.done.wait (%p4983_p9), [#allocation4], 512   ;;  %p4984_p6 = pmov %p4983_p9 }
 0x16d   : > { %4191 = vsyncadd (%p4984_p6), [#allocation4], 4294966784  ;;  %p4985_p10 = pmov %p4984_p6 }
 0x16e   : > { %p4986_p11 = pmov %p4984_p6 }
 0x16f   : > { %4193 = dma.done.wait (%p4985_p10), [#allocation6], 528  }
 0x170   : > { %4195 = vsyncadd (%p4986_p11), [#allocation6], 4294966768  ;;  %p4987_p12 = pmov %p4984_p6 }
 0x171   : > { %p4988_p5 = pmov %p4984_p6 }
 0x172   : > { %4197 = dma.done.wait (%p4987_p12), [#allocation9], 528  }
 0x173   : > { %4199 = vsyncadd (%p4988_p5), [#allocation9], 4294966768  ;;  %p4989_p13 = pmov %p4988_p5 }
 0x174   : > { %p4990_p0 = pmov %p4988_p5 }
 0x175   : > { %4201 = dma.done.wait (%p4989_p13), [#allocation12], 528  }
 0x176   : > { %4203 = vsyncadd (%p4990_p0), [#allocation12], 4294966768  ;;  %p4991_p1 = pmov %p4990_p0 }
 0x177   : > { %p4992_p2 = pmov %p4990_p0 }
 0x178   : > { %4205 = dma.done.wait (%p4991_p1), [#allocation15], 528  }
 0x179   : > { %4207 = vsyncadd (%p4992_p2), [#allocation15], 4294966768  ;;  %p4993_p3 = pmov %p4990_p0 }
 0x17a   : > { %p4994_p4 = pmov %p4990_p0 }
 0x17b   : > { %4209 = dma.done.wait (%p4993_p3), [#allocation18], 528  }
 0x17c   : > { %4211 = vsyncadd (%p4994_p4), [#allocation18], 4294966768  ;;  %p4995_p8 = pmov %p4990_p0 }
 0x17d   : > { %p4996_p7 = pmov %p4990_p0 }
 0x17e   : > { %4213 = dma.done.wait (%p4995_p8), [#allocation21], 528  }
 0x17f   : > { %4215 = vsyncadd (%p4996_p7), [#allocation21], 4294966768  ;;  %p4997_p9 = pmov %p4990_p0 }
 0x180   : > { %p4998_p6 = pmov %p4990_p0 }
 0x181   : > { %4217 = dma.done.wait (%p4997_p9), [#allocation24], 528  }
 0x182   : > { %4219 = vsyncadd (%p4998_p6), [#allocation24], 4294966768  ;;  %p4999_p10 = pmov %p4990_p0 }
 0x183   : > { %p5000_p11 = pmov %p4990_p0 }
 0x184   : > { %4221 = dma.done.wait (%p4999_p10), [#allocation27], 528  }
 0x185   : > { %4223 = vsyncadd (%p5000_p11), [#allocation27], 4294966768  ;;  %p5001_p12 = pmov %p4990_p0 }
 0x186   : > { %p5002_p5 = pmov %p4990_p0 }
 0x187   : > { %4225 = dma.done.wait (%p5001_p12), [#allocation30], 528  }
 0x188   : > { %4227 = vsyncadd (%p5002_p5), [#allocation30], 4294966768  ;;  %p5003_p13 = pmov %p4990_p0 }
 0x18a   : > { %4229 = dma.done.wait (%p5003_p13), [#allocation33], 528  }
 0x18b   : > { %4231 = vsyncadd (%p4990_p0), [#allocation33], 4294966768  ;;  %p5004_p1 = pmov %p4990_p0 }
 0x18c   : > { %p5005_p2 = pmov %p4990_p0 }
 0x18d   : > { %4233 = dma.done.wait (%p5004_p1), [#allocation36], 528  }
 0x18e   : > { %4235 = vsyncadd (%p5005_p2), [#allocation36], 4294966768  ;;  %s5006_s24 = sld [smem:[#allocation52_spill]]  ;;  %p1525_p3 = scmp.lt.s32.totalorder %s4525_s0, 1  ;;  %v4305_v1 = vmov 0.0   ;;  %vm4306_vm0 = vmmov 0  }
 0x18f   : > { %s5007_s11 = sld [smem:[#allocation50_spill]]  ;;  %3139 = vmatprep.subr.bf16.mxu0 %v4305_v1  ;;  %3143 = vmatprep.mubr.msk.bf16.mxu0 %vm4306_vm0, %v4305_v1  ;;  %vm1644_vm1 = vcmask 261120   ;;  %v1570_v55 = vld [vmem:[#allocation5 + $0x10] sm:$0xff]  ;;  %v1571_v56 = vld [vmem:[#allocation5 + $0x18] sm:$0xff]  ;;  %v1568_v63 = vld [vmem:[#allocation5] sm:$0xff]  ;;  %vm2638_vm2 = vcmask 269568  }
 0x190   : > { %s5008_s22 = sld [smem:[#allocation54_spill]]  ;;  %s5021_s0 = smov (!%p1525_p3, %s4525_s0), 1  ;;  %3147 = vmatprep.subr.bf16.mxu1 %v4305_v1  ;;  %3151 = vmatprep.mubr.msk.bf16.mxu1 %vm4306_vm0, %v4305_v1  ;;  %v1954_v60 = vpack.c.bf16 %v1571_v56, %v1570_v55  ;;  %v1569_v0 = vld [vmem:[#allocation5 + $0x8] sm:$0xff]  ;;  %v1586_v55 = vld [vmem:[#allocation14 + $0x18] sm:$0xff]  ;;  %vm2644_vm3 = vcmask 531720   ;;  %vm2646_vm4 = vcmask 540168  }
 0x191   : > { %s4774_s2 = sshll.u32 %s5021_s0, 3  ;;  %s5009_s23 = sld [smem:[#allocation56_spill]]  ;;  %vm2652_vm5 = vcmask 564752   ;;  %vm2658_vm6 = vcmask 572968  }
 0x192   : > { %s5010_s0 = sld [smem:[#allocation53_spill]] }
 0x193   : > { %s5011_s3 = sld [smem:[#allocation58_spill]] }
 0x194   : > { %v1540_v2 = vld [vmem:[%s5006_s24 + $0x10] sm:$0xff]  ;;  %v1541_v3 = vld [vmem:[%s5006_s24 + $0x18] sm:$0xff]  ;;  %v1538_v4 = vld [vmem:[%s5006_s24] sm:$0xff]  ;;  %s5012_s6 = sld [smem:[#allocation51_spill]] }
 0x195   : > { %s1528_s15 = scalar_lea.vmem %s5007_s11, %s4774_s2  ;;  %v1637_v5 = vpack.c.bf16 %v1541_v3, %v1540_v2  ;;  %v1539_v6 = vld [vmem:[%s5006_s24 + $0x8] sm:$0xff]  ;;  %s5013_s18 = sld [smem:[#allocation55_spill]]  ;;  %v1953_v2 = vpack.c.bf16 %v1569_v0, %v1568_v63  ;;  %v1565_v3 = vld [vmem:[#allocation3 + $0x10] sm:$0xff] }
 0x196   : > { %v1545_v7 = vld [vmem:[%s5008_s22 + $0x10] sm:$0xff]  ;;  %v1546_v8 = vld [vmem:[%s5008_s22 + $0x18] sm:$0xff]  ;;  %v1636_v9 = vpack.c.bf16 %v1539_v6, %v1538_v4  ;;  %v1633_v10 = vld [vmem:[%s1528_s15] sm:$0xff]  ;;  %s5014_s1 = sld [smem:[#allocation60_spill]]  ;;  %s4911_s15 = scalar_lea.vmem %s4517_s9, %s4774_s2 }
 0x197   : > { %3140 = vmatpush3.bf16.msra.mxu0 %v1637_v5  ;;  %v1691_v11 = vpack.c.bf16 %v1546_v8, %v1545_v7  ;;  %v1635_v12 = vpack.c.bf16 %v1633_v10, %v1633_v10  ;;  %v1543_v13 = vld [vmem:[%s5008_s22] sm:$0xff]  ;;  %v1544_v14 = vld [vmem:[%s5008_s22 + $0x8] sm:$0xff]  ;;  %v1550_v16 = vld [vmem:[%s5009_s23 + $0x10] sm:$0xff]  ;;  %s5015_s10 = sld [smem:[#allocation59_spill]] }
 0x198   : > { %3141 = vmatprep.subr.bf16.mxu0 %v4305_v1  ;;  %v1690_v15 = vpack.c.bf16 %v1544_v14, %v1543_v13  ;;  %v1551_v17 = vld [vmem:[%s5009_s23 + $0x18] sm:$0xff]  ;;  %v3040_v19 = vld [vmem:[%s5010_s0] ss:$0 sm:$0xff]  ;;  %v1549_v36 = vld [vmem:[%s5009_s23 + $0x8] sm:$0xff]  ;;  %s5016_s26 = sld [smem:[#allocation57_spill]]  ;;  %s4309_s0 = smov 66  }
 0x199   : > { %3148 = vmatpush3.bf16.msra.mxu1 %v1691_v11  ;;  %v1744_v18 = vpack.c.bf16 %v1551_v17, %v1550_v16  ;;  %v1555_v22 = vld [vmem:[%s5011_s3 + $0x10] sm:$0xff]  ;;  %v1556_v23 = vld [vmem:[%s5011_s3 + $0x18] sm:$0xff]  ;;  %v1553_v29 = vld [vmem:[%s5011_s3] sm:$0xff]  ;;  %s5017_s16 = sld [smem:[#allocation61_spill]] }
 0x19a   : > { %3149 = vmatprep.subr.bf16.mxu1 %v4305_v1  ;;  %v1796_v27 = vpack.c.bf16 %v1556_v23, %v1555_v22  ;;  %v1554_v30 = vld [vmem:[%s5011_s3 + $0x8] sm:$0xff]  ;;  %s1532_s7 = scalar_lea.vmem %s5012_s6, %s4774_s2  ;;  %v1548_v35 = vld [vmem:[%s5009_s23] sm:$0xff]  ;;  %s5018_s4 = sld [smem:[#allocation62_spill]] }
 0x19b   : > { %3142 = vmatpush3.bf16.msra.mxu0 %v1636_v9  ;;  %v1795_v32 = vpack.c.bf16 %v1554_v30, %v1553_v29  ;;  %v1634_v33 = vld [vmem:[%s1532_s7] sm:$0xff]  ;;  %v1743_v37 = vpack.c.bf16 %v1549_v36, %v1548_v35  ;;  %v1564_v7 = vld [vmem:[#allocation3 + $0x8] sm:$0xff]  ;;  %s5019_s11 = sld [smem:[#allocation69_spill]]  ;;  %s4308_s2 = smov 33  }
 0x19c   : > { %3155 = vmatprep.subr.bf16.mxu0 %v4305_v1  ;;  %v1794_v34 = vpack.c.bf16 %v1634_v33, %v1634_v33  ;;  %v3042_v38 = vld [vmem:[%s5013_s18] ss:$0 sm:$0xff]  ;;  %v1560_v41 = vld [vmem:[%s5014_s1 + $0x10] sm:$0xff]  ;;  %v1561_v42 = vld [vmem:[%s5014_s1 + $0x18] sm:$0xff]  ;;  %s4310_s6 = smov 69  }
 0x19d   : > { %3150 = vmatpush3.bf16.msra.mxu1 %v1690_v15  ;;  %v1849_v46 = vpack.c.bf16 %v1561_v42, %v1560_v41  ;;  %v1558_v48 = vld [vmem:[%s5014_s1] sm:$0xff]  ;;  %v1559_v49 = vld [vmem:[%s5014_s1 + $0x8] sm:$0xff] }
 0x19e   : > { %3144 = vmatmul.mubr.msk.bf16.vlgmr.msra.gmra.mxu0 %vm1644_vm1, %v1635_v12  ;;  %3163 = vmatprep.subr.bf16.mxu1 %v4305_v1  ;;  %v3046_v51 = vld [vmem:[%s5015_s10] ss:$0 sm:$0xff]  ;;  %v1848_v53 = vpack.c.bf16 %v1559_v49, %v1558_v48  ;;  %v1563_v6 = vld [vmem:[#allocation3] sm:$0xff]  ;;  %v1580_v48 = vld [vmem:[#allocation11 + $0x10] sm:$0xff] }
 0x19f   : > { %3159 = vmatprep.mubr.msk.bf16.mxu0 %vm4306_vm0, %v4305_v1  ;;  %3156 = vmatpush3.bf16.msra.mxu0 %v1744_v18  ;;  %v1566_v4 = vld [vmem:[#allocation3 + $0x18] sm:$0xff]  ;;  %v1901_v8 = vpack.c.bf16 %v1564_v7, %v1563_v6  ;;  %v3052_v30 = vld [vmem:[#allocation7] ss:$0 sm:$0xff] }
 0x1a0   : > { %3157 = vmatprep.subr.bf16.mxu0 %v4305_v1  ;;  %v1902_v5 = vpack.c.bf16 %v1566_v4, %v1565_v3  ;;  %v3044_v9 = vld [vmem:[%s5016_s26] ss:$0 sm:$0xff]  ;;  %v1591_v6 = vld [vmem:[#allocation17 + $0x18] sm:$0xff] }
 0x1a1   : > { %v3048_v16 = vld [vmem:[%s5017_s16] ss:$0 sm:$0xff] }
 0x1a2   : > { %v1581_v49 = vld [vmem:[#allocation11 + $0x18] sm:$0xff] }
 0x1a3   : > { %3158 = vmatpush3.bf16.msra.mxu0 %v1743_v37  ;;  %v3050_v37 = vld [vmem:[%s5018_s4] ss:$0 sm:$0xff] }
 0x1a4   : > { %3171 = vmatprep.subr.bf16.mxu0 %v4305_v1 }
 0x25e   : > { %v1682_v20 = vpop.f32.mrf.mxu0 }
 0x25f   : > { %v1683_v21 = vadd.f32 %v3040_v19, %v1682_v20 }
 0x260   : > { %v3145_v24 = vpop.f32.mrf.mxu0 }
 0x261   : > { %v1688_v25 = vmax.f32 %v1683_v21, 0.0  ;;  %v1575_v24 = vld [vmem:[#allocation8 + $0x10] sm:$0xff] }
 0x262   : > { %v1685_v26 = vpop.f32.mrf.mxu0 }
 0x263   : > { %v1689_v28 = vpack.c.bf16 %v1688_v25, %v1688_v25  ;;  %v1576_v25 = vld [vmem:[#allocation8 + $0x18] sm:$0xff] }
 0x264   : > { %v3146_v31 = vpop.f32.mrf.mxu0  ;;  %v2012_v26 = vpack.c.bf16 %v1576_v25, %v1575_v24 }
 0x265   : > { %3152 = vmatmul.mubr.msk.bf16.vlgmr.msra.gmra.mxu1 %vm1644_vm1, %v1689_v28  ;;  %v1574_v28 = vld [vmem:[#allocation8 + $0x8] sm:$0xff] }
 0x266   : > { %3164 = vmatpush3.bf16.msra.mxu1 %v1796_v27  ;;  %3167 = vmatprep.mubr.msk.bf16.mxu1 %vm4306_vm0, %v4305_v1  ;;  %v1573_v27 = vld [vmem:[#allocation8] sm:$0xff] }
 0x267   : > { %3165 = vmatprep.subr.bf16.mxu1 %v4305_v1  ;;  %v2011_v29 = vpack.c.bf16 %v1574_v28, %v1573_v27 }
 0x26a   : > { %3166 = vmatpush3.bf16.msra.mxu1 %v1795_v32 }
 0x26b   : > { %3179 = vmatprep.subr.bf16.mxu1 %v4305_v1 }
 0x26d   : > { %3168 = vmatmul.mubr.msk.bf16.vlgmr.msra.gmra.mxu1 %vm1644_vm1, %v1794_v34 }
 0x26e   : > { %3183 = vmatprep.mubr.msk.bf16.mxu1 %vm4306_vm0, %v4305_v1  ;;  %3180 = vmatpush3.bf16.msra.mxu1 %v1902_v5  ;;  %v1590_v5 = vld [vmem:[#allocation17 + $0x10] sm:$0xff] }
 0x26f   : > { %3181 = vmatprep.subr.bf16.mxu1 %v4305_v1 }
 0x272   : > { %3182 = vmatpush3.bf16.msra.mxu1 %v1901_v8  ;;  %v2177_v8 = vpack.c.bf16 %v1591_v6, %v1590_v5 }
 0x273   : > { %3195 = vmatprep.subr.bf16.mxu1 %v4305_v1 }
 0x325   : > { %v1735_v39 = vpop.f32.mrf.mxu1 }
 0x326   : > { %v1736_v40 = vadd.f32 %v3042_v38, %v1735_v39 }
 0x327   : > { %v3153_v43 = vpop.f32.mrf.mxu1 }
 0x328   : > { %v1741_v44 = vmax.f32 %v1736_v40, 0.0 }
 0x329   : > { %v1738_v45 = vpop.f32.mrf.mxu1 }
 0x32a   : > { %v1742_v47 = vpack.c.bf16 %v1741_v44, %v1741_v44 }
 0x32b   : > { %v3154_v50 = vpop.f32.mrf.mxu1 }
 0x32c   : > { %3160 = vmatmul.mubr.msk.bf16.vlgmr.msra.gmra.mxu0 %vm1644_vm1, %v1742_v47  ;;  %v1578_v50 = vld [vmem:[#allocation11] sm:$0xff] }
 0x32d   : > { %3172 = vmatpush3.bf16.msra.mxu0 %v1849_v46  ;;  %v1840_v52 = vpop.f32.mrf.mxu1  ;;  %3175 = vmatprep.mubr.msk.bf16.mxu0 %vm4306_vm0, %v4305_v1 }
 0x32e   : > { %v1841_v54 = vadd.f32 %v3046_v51, %v1840_v52  ;;  %3173 = vmatprep.subr.bf16.mxu0 %v4305_v1  ;;  %v2073_v51 = vpack.c.bf16 %v1581_v49, %v1580_v48  ;;  %v1579_v52 = vld [vmem:[#allocation11 + $0x8] sm:$0xff]  ;;  %v1610_v48 = vld [vmem:[#allocation28 + $0x10] sm:$0xff] }
 0x32f   : > { %v3169_v57 = vpop.f32.mrf.mxu1  ;;  %v1611_v49 = vld [vmem:[#allocation28 + $0x18] sm:$0xff] }
 0x330   : > { %v1846_v58 = vmax.f32 %v1841_v54, 0.0  ;;  %v1585_v54 = vld [vmem:[#allocation14 + $0x10] sm:$0xff]  ;;  %v3055_v57 = vld [vmem:[#allocation10] ss:$0 sm:$0xff] }
 0x331   : > { %3174 = vmatpush3.bf16.msra.mxu0 %v1848_v53  ;;  %v1843_v59 = vpop.f32.mrf.mxu1  ;;  %v2072_v53 = vpack.c.bf16 %v1579_v52, %v1578_v50  ;;  %v2126_v56 = vpack.c.bf16 %v1586_v55, %v1585_v54  ;;  %v1608_v55 = vld [vmem:[#allocation28] sm:$0xff] }
 0x332   : > { %v1847_v61 = vpack.c.bf16 %v1846_v58, %v1846_v58  ;;  %3187 = vmatprep.subr.bf16.mxu0 %v4305_v1 }
 0x333   : > { %v3170_v62 = vpop.f32.mrf.mxu1 }
 0x334   : > { %3176 = vmatmul.mubr.msk.bf16.vlgmr.msra.gmra.mxu0 %vm1644_vm1, %v1847_v61 }
 0x335   : > { %3188 = vmatpush3.bf16.msra.mxu0 %v1954_v60  ;;  %3191 = vmatprep.mubr.msk.bf16.mxu0 %vm4306_vm0, %v4305_v1 }
 0x336   : > { %3189 = vmatprep.subr.bf16.mxu0 %v4305_v1 }
 0x339   : > { %3190 = vmatpush3.bf16.msra.mxu0 %v1953_v2 }
 0x33a   : > { %3203 = vmatprep.subr.bf16.mxu0 %v4305_v1 }
 0x3ec   : > { %v1788_v10 = vpop.f32.mrf.mxu0 }
 0x3ed   : > { %v4833_v11 = vadd.f32 %v3044_v9, %v1788_v10  ;;  %v1588_v10 = vld [vmem:[#allocation17] sm:$0xff] }
 0x3ee   : > { %v3161_v12 = vpop.f32.mrf.mxu0 }
 0x3ef   : > { %v1952_v13 = vpack.c.bf16 %v4833_v11, %v4833_v11  ;;  %v1589_v12 = vld [vmem:[#allocation17 + $0x8] sm:$0xff] }
 0x3f0   : > { %v1791_v14 = vpop.f32.mrf.mxu0 }
 0x3f1   : > { %3192 = vmatmul.mubr.msk.bf16.vlgmr.msra.gmra.mxu0 %vm1644_vm1, %v1952_v13  ;;  %v2176_v13 = vpack.c.bf16 %v1589_v12, %v1588_v10  ;;  %v1584_v14 = vld [vmem:[#allocation14 + $0x8] sm:$0xff]  ;;  %v3066_v10 = vld [vmem:[#allocation23] ss:$0 sm:$0xff] }
 0x3f2   : > { %v3162_v15 = vpop.f32.mrf.mxu0  ;;  %3207 = vmatprep.mubr.msk.bf16.mxu0 %vm4306_vm0, %v4305_v1  ;;  %3204 = vmatpush3.bf16.msra.mxu0 %v2073_v51 }
 0x3f3   : > { %3205 = vmatprep.subr.bf16.mxu0 %v4305_v1 }
 0x3f4   : > { %v1893_v17 = vpop.f32.mrf.mxu0 }
 0x3f5   : > { %v1894_v18 = vadd.f32 %v3048_v16, %v1893_v17  ;;  %v1600_v16 = vld [vmem:[#allocation22 + $0x10] sm:$0xff]  ;;  %v1601_v17 = vld [vmem:[#allocation22 + $0x18] sm:$0xff] }
 0x3f6   : > { %v3177_v19 = vpop.f32.mrf.mxu0  ;;  %3206 = vmatpush3.bf16.msra.mxu0 %v2072_v53  ;;  %v2383_v53 = vpack.c.bf16 %v1611_v49, %v1610_v48  ;;  %v1628_v49 = vld [vmem:[%s4509_s5] sm:$0xff] }
 0x3f7   : > { %v1899_v20 = vmax.f32 %v1894_v18, 0.0  ;;  %3219 = vmatprep.subr.bf16.mxu0 %v4305_v1  ;;  %v2279_v18 = vpack.c.bf16 %v1601_v17, %v1600_v16  ;;  %v3058_v19 = vld [vmem:[#allocation13] ss:$0 sm:$0xff] }
 0x3f8   : > { %v1896_v21 = vpop.f32.mrf.mxu0 }
 0x3f9   : > { %v1900_v22 = vpack.c.bf16 %v1899_v20, %v1899_v20 }
 0x3fa   : > { %v3178_v23 = vpop.f32.mrf.mxu0 }
 0x3fb   : > { %3184 = vmatmul.mubr.msk.bf16.vlgmr.msra.gmra.mxu1 %vm1644_vm1, %v1900_v22  ;;  %v1595_v22 = vld [vmem:[%s5019_s11 + $0x10] sm:$0xff]  ;;  %v1596_v23 = vld [vmem:[%s5019_s11 + $0x18] sm:$0xff] }
 0x3fc   : > { %3199 = vmatprep.mubr.msk.bf16.mxu1 %vm4306_vm0, %v4305_v1  ;;  %3196 = vmatpush3.bf16.msra.mxu1 %v2012_v26  ;;  %v2227_v27 = vpack.c.bf16 %v1596_v23, %v1595_v22  ;;  %v3070_v23 = vld [vmem:[#allocation29] ss:$0 sm:$0xff] }
 0x3fd   : > { %3197 = vmatprep.subr.bf16.mxu1 %v4305_v1 }
 0x400   : > { %3198 = vmatpush3.bf16.msra.mxu1 %v2011_v29  ;;  %v1593_v29 = vld [vmem:[%s5019_s11] sm:$0xff] }
 0x401   : > { %3211 = vmatprep.subr.bf16.mxu1 %v4305_v1 }
 0x4b1   : > { %v1998_v31 = vpop.f32.mrf.mxu0 }
 0x4b2   : > { %v1999_v32 = vadd.f32 %v3052_v30, %v1998_v31  ;;  %v1594_v30 = vld [vmem:[%s5019_s11 + $0x8] sm:$0xff] }
 0x4b3   : > { %v3193_v33 = vpop.f32.mrf.mxu0 }
 0x4b4   : > { %v3054_v34 = vmul.f32 -1.442695, %v1999_v32  ;;  %v3062_v32 = vld [vmem:[#allocation19] ss:$0 sm:$0xff] }
 0x4b5   : > { %v2001_v35 = vpop.f32.mrf.mxu0 }
 0x4b6   : > { %3578 = vpow2.f32 %v3054_v34  ;;  %v2226_v34 = vpack.c.bf16 %v1594_v30, %v1593_v29 }
 0x4b7   : > { %v3194_v36 = vpop.f32.mrf.mxu0 }
 0x4bb   : > { %v1946_v38 = vpop.f32.mrf.mxu1 }
 0x4bc   : > { %v1947_v39 = vadd.f32 %v3050_v37, %v1946_v38 }
 0x4bd   : > { %v3185_v40 = vpop.f32.mrf.mxu1 }
 0x4be   : > { %v2010_v41 = vpack.c.bf16 %v1947_v39, %v1947_v39 }
 0x4bf   : > { %v1949_v42 = vpop.f32.mrf.mxu1 }
 0x4c0   : > { %3200 = vmatmul.mubr.msk.bf16.vlgmr.msra.gmra.mxu1 %vm1644_vm1, %v2010_v41  ;;  %v1598_v41 = vld [vmem:[#allocation22] sm:$0xff]  ;;  %v1599_v42 = vld [vmem:[#allocation22 + $0x8] sm:$0xff] }
 0x4c1   : > { %v3186_v43 = vpop.f32.mrf.mxu1  ;;  %3215 = vmatprep.mubr.msk.bf16.mxu1 %vm4306_vm0, %v4305_v1  ;;  %3212 = vmatpush3.bf16.msra.mxu1 %v2126_v56  ;;  %v1609_v56 = vld [vmem:[#allocation28 + $0x8] sm:$0xff] }
 0x4c2   : > { %3213 = vmatprep.subr.bf16.mxu1 %v4305_v1  ;;  %v2278_v43 = vpack.c.bf16 %v1599_v42, %v1598_v41 }
 0x4c3   : > { %v3579_v44 = vpop.eup %3578 }
 0x4c4   : > { %v2007_v45 = vadd.f32 1.0, %v3579_v44  ;;  %v1605_v44 = vld [vmem:[#allocation25 + $0x10] sm:$0xff] }
 0x4c6   : > { %3580 = vrcp.f32 %v2007_v45  ;;  %v1606_v45 = vld [vmem:[#allocation25 + $0x18] sm:$0xff] }
 0x4d3   : > { %v3581_v46 = vpop.eup %3580 }
 0x4d4   : > { %v2068_v47 = vmul.f32 %v3581_v46, %v1947_v39  ;;  %v2332_v46 = vpack.c.bf16 %v1606_v45, %v1605_v44 }
 0x580   : > { %v2056_v58 = vpop.f32.mrf.mxu1 }
 0x581   : > { %v2057_v59 = vadd.f32 %v3055_v57, %v2056_v58 }
 0x582   : > { %v3201_v60 = vpop.f32.mrf.mxu1 }
 0x583   : > { %v3057_v61 = vmul.f32 -1.442695, %v2057_v59  ;;  %v2382_v59 = vpack.c.bf16 %v1609_v56, %v1608_v55  ;;  %v1620_v60 = vld [vmem:[#allocation34 + $0x10] sm:$0xff] }
 0x584   : > { %v2059_v62 = vpop.f32.mrf.mxu1 }
 0x585   : > { %3582 = vpow2.f32 %v3057_v61  ;;  %v1621_v61 = vld [vmem:[#allocation34 + $0x18] sm:$0xff] }
 0x586   : > { %v3202_v63 = vpop.f32.mrf.mxu1 }
 0x592   : > { %v3583_v0 = vpop.eup %3582 }
 0x593   : > { %v2065_v2 = vadd.f32 1.0, %v3583_v0  ;;  %v2484_v0 = vpack.c.bf16 %v1621_v61, %v1620_v60  ;;  %v3064_v61 = vld [vmem:[#allocation20] ss:$0 sm:$0xff] }
 0x595   : > { %3584 = vrcp.f32 %v2065_v2  ;;  %v1618_v2 = vld [vmem:[#allocation34] sm:$0xff] }
 0x5a2   : > { %v3585_v3 = vpop.eup %3584 }
 0x5a3   : > { %v2069_v4 = vmul.f32 %v3585_v3, %v4833_v11  ;;  %v1583_v11 = vld [vmem:[#allocation14] sm:$0xff]  ;;  %v1619_v3 = vld [vmem:[#allocation34 + $0x8] sm:$0xff] }
 0x5a4   : > { %v2125_v15 = vpack.c.bf16 %v1584_v14, %v1583_v11  ;;  %v2483_v6 = vpack.c.bf16 %v1619_v3, %v1618_v2  ;;  %v1615_v11 = vld [vmem:[#allocation31 + $0x10] sm:$0xff]  ;;  %v1616_v14 = vld [vmem:[#allocation31 + $0x18] sm:$0xff] }
 0x5a5   : > { %v2070_v7 = vadd.f32 %v2069_v4, %v2068_v47  ;;  %v3060_v47 = vld [vmem:[#allocation16] ss:$0 sm:$0xff] }
 0x5a6   : > { %3214 = vmatpush3.bf16.msra.mxu1 %v2125_v15 }
 0x5a7   : > { %v2071_v9 = vpack.c.bf16 %v2070_v7, %v2070_v7  ;;  %3227 = vmatprep.subr.bf16.mxu1 %v4305_v1  ;;  %v1603_v7 = vld [vmem:[#allocation25] sm:$0xff] }
 0x5a9   : > { %3208 = vmatmul.mubr.msk.bf16.vlgmr.msra.gmra.mxu0 %vm1644_vm1, %v2071_v9 }
 0x5aa   : > { %3220 = vmatpush3.bf16.msra.mxu0 %v2177_v8  ;;  %3223 = vmatprep.mubr.msk.bf16.mxu0 %vm4306_vm0, %v4305_v1  ;;  %v1604_v8 = vld [vmem:[#allocation25 + $0x8] sm:$0xff] }
 0x5ab   : > { %3221 = vmatprep.subr.bf16.mxu0 %v4305_v1 }
 0x5ae   : > { %3222 = vmatpush3.bf16.msra.mxu0 %v2176_v13 }
 0x5af   : > { %3235 = vmatprep.subr.bf16.mxu0 %v4305_v1 }
 0x5b1   : > { %3224 = vmatmul.mubr.msk.bf16.vlgmr.msra.gmra.mxu0 %vm1644_vm1, %v2071_v9  ;;  %v2331_v9 = vpack.c.bf16 %v1604_v8, %v1603_v7 }
 0x5b2   : > { %3239 = vmatprep.mubr.msk.bf16.mxu0 %vm4306_vm0, %v4305_v1  ;;  %3236 = vmatpush3.bf16.msra.mxu0 %v2279_v18  ;;  %v2433_v18 = vpack.c.bf16 %v1616_v14, %v1615_v11  ;;  %v3078_v11 = vld [vmem:[#allocation2] ss:$0 sm:$0xff] }
 0x5b3   : > { %3237 = vmatprep.subr.bf16.mxu0 %v4305_v1 }
 0x5b6   : > { %3238 = vmatpush3.bf16.msra.mxu0 %v2278_v43 }
 0x5b7   : > { %3251 = vmatprep.subr.bf16.mxu0 %v4305_v1 }
 0x669   : > { %v2117_v20 = vpop.f32.mrf.mxu0 }
 0x66a   : > { %v2118_v21 = vadd.f32 %v3058_v19, %v2117_v20  ;;  %v1613_v20 = vld [vmem:[#allocation31] sm:$0xff] }
 0x66b   : > { %v3209_v24 = vpop.f32.mrf.mxu0 }
 0x66c   : > { %v2123_v25 = vmax.f32 %v2118_v21, 0.0  ;;  %v1614_v21 = vld [vmem:[#allocation31 + $0x8] sm:$0xff] }
 0x66d   : > { %v2120_v26 = vpop.f32.mrf.mxu0 }
 0x66e   : > { %v2124_v28 = vpack.c.bf16 %v2123_v25, %v2123_v25  ;;  %v2432_v25 = vpack.c.bf16 %v1614_v21, %v1613_v20 }
 0x66f   : > { %v3210_v31 = vpop.f32.mrf.mxu0 }
 0x670   : > { %3216 = vmatmul.mubr.msk.bf16.vlgmr.msra.gmra.mxu1 %vm1644_vm1, %v2124_v28  ;;  %v1626_v28 = vld [vmem:[#allocation37 + $0x18] sm:$0xff] }
 0x671   : > { %v2218_v33 = vpop.f32.mrf.mxu0  ;;  %3228 = vmatpush3.bf16.msra.mxu1 %v2227_v27  ;;  %3231 = vmatprep.mubr.msk.bf16.mxu1 %vm4306_vm0, %v4305_v1  ;;  %v1625_v27 = vld [vmem:[#allocation37 + $0x10] sm:$0xff] }
 0x672   : > { %v2219_v35 = vadd.f32 %v3062_v32, %v2218_v33  ;;  %3229 = vmatprep.subr.bf16.mxu1 %v4305_v1  ;;  %v2534_v32 = vpack.c.bf16 %v1626_v28, %v1625_v27 }
 0x673   : > { %v3225_v36 = vpop.f32.mrf.mxu0 }
 0x674   : > { %v2224_v37 = vmax.f32 %v2219_v35, 0.0  ;;  %v1624_v35 = vld [vmem:[#allocation37 + $0x8] sm:$0xff] }
 0x675   : > { %v2221_v38 = vpop.f32.mrf.mxu0  ;;  %3230 = vmatpush3.bf16.msra.mxu1 %v2226_v34  ;;  %v1623_v34 = vld [vmem:[#allocation37] sm:$0xff] }
 0x676   : > { %v2225_v39 = vpack.c.bf16 %v2224_v37, %v2224_v37  ;;  %3243 = vmatprep.subr.bf16.mxu1 %v4305_v1  ;;  %v3074_v37 = vld [vmem:[#allocation35] ss:$0 sm:$0xff] }
 0x677   : > { %v3226_v40 = vpop.f32.mrf.mxu0 }
 0x678   : > { %3232 = vmatmul.mubr.msk.bf16.vlgmr.msra.gmra.mxu1 %vm1644_vm1, %v2225_v39  ;;  %v2533_v39 = vpack.c.bf16 %v1624_v35, %v1623_v34 }
 0x679   : > { %3247 = vmatprep.mubr.msk.bf16.mxu1 %vm4306_vm0, %v4305_v1  ;;  %3244 = vmatpush3.bf16.msra.mxu1 %v2332_v46  ;;  %v1630_v46 = vld [vmem:[%s4509_s5 + $0x10] sm:$0xff] }
 0x67a   : > { %3245 = vmatprep.subr.bf16.mxu1 %v4305_v1 }
 0x67d   : > { %3246 = vmatpush3.bf16.msra.mxu1 %v2331_v9 }
 0x67e   : > { %3259 = vmatprep.subr.bf16.mxu1 %v4305_v1 }
 0x730   : > { %v2170_v50 = vpop.f32.mrf.mxu1 }
 0x731   : > { %v2171_v51 = vadd.f32 %v3060_v47, %v2170_v50  ;;  %v1631_v47 = vld [vmem:[%s4509_s5 + $0x18] sm:$0xff]  ;;  %v1629_v50 = vld [vmem:[%s4509_s5 + $0x8] sm:$0xff] }
 0x732   : > { %v3217_v52 = vpop.f32.mrf.mxu1  ;;  %v2587_v48 = vpack.c.bf16 %v1631_v47, %v1630_v46 }
 0x733   : > { %v2277_v54 = vpack.c.bf16 %v2171_v51, %v2171_v51  ;;  %v2586_v51 = vpack.c.bf16 %v1629_v50, %v1628_v49  ;;  %v3068_v52 = vld [vmem:[#allocation26] ss:$0 sm:$0xff] }
 0x734   : > { %v2173_v57 = vpop.f32.mrf.mxu1 }
 0x735   : > { %3240 = vmatmul.mubr.msk.bf16.vlgmr.msra.gmra.mxu0 %vm1644_vm1, %v2277_v54  ;;  %v4307_v57 = vmov 1.0  }
 0x736   : > { %3252 = vmatpush3.bf16.msra.mxu0 %v2383_v53  ;;  %v3218_v58 = vpop.f32.mrf.mxu1  ;;  %3255 = vmatprep.mubr.msk.bf16.mxu0 %vm4306_vm0, %v4305_v1 }
 0x737   : > { %3253 = vmatprep.subr.bf16.mxu0 %v4305_v1  ;;  %v3072_v58 = vld [vmem:[#allocation32] ss:$0 sm:$0xff] }
 0x738   : > { %v4882_v62 = vpop.f32.mrf.mxu1 }
 0x739   : > { %v2272_v2 = vadd.f32 %v3064_v61, %v4882_v62 }
 0x73a   : > { %3254 = vmatpush3.bf16.msra.mxu0 %v2382_v59  ;;  %v3233_v63 = vpop.f32.mrf.mxu1 }
 0x73b   : > { %3267 = vmatprep.subr.bf16.mxu0 %v4305_v1 }
 0x73c   : > { %v2274_v4 = vpop.f32.mrf.mxu1 }
 0x73d   : > { %3256 = vmatmul.mubr.msk.bf16.vlgmr.msra.gmra.mxu0 %vm1644_vm1, %v2277_v54  ;;  %v3076_v4 = vld [vmem:[%s4504_s14] ss:$0 sm:$0xff] }
 0x73e   : > { %3268 = vmatpush3.bf16.msra.mxu0 %v2484_v0  ;;  %v3234_v5 = vpop.f32.mrf.mxu1  ;;  %3271 = vmatprep.mubr.msk.bf16.mxu0 %vm4306_vm0, %v4305_v1 }
 0x73f   : > { %3269 = vmatprep.subr.bf16.mxu0 %v4305_v1 }
 0x742   : > { %3270 = vmatpush3.bf16.msra.mxu0 %v2483_v6 }
 0x743   : > { %3283 = vmatprep.subr.bf16.mxu0 %v4305_v1 }
 0x745   : > { %3272 = vmatmul.mubr.msk.bf16.vlgmr.msra.gmra.mxu0 %vm1644_vm1, %v2277_v54 }
 0x746   : > { %3287 = vmatprep.mubr.msk.bf16.mxu0 %vm4306_vm0, %v4305_v1  ;;  %3284 = vmatpush3.bf16.msra.mxu0 %v2587_v48 }
 0x747   : > { %3285 = vmatprep.subr.bf16.mxu0 %v4305_v1 }
 0x74a   : > { %3286 = vmatpush3.bf16.msra.mxu0 %v2586_v51 }
 0x7f5   : > { %v2323_v12 = vpop.f32.mrf.mxu0 }
 0x7f6   : > { %v2324_v13 = vadd.f32 %v3066_v10, %v2323_v12 }
 0x7f7   : > { %v3241_v15 = vpop.f32.mrf.mxu0 }
 0x7f8   : > { %v2329_v16 = vmax.f32 %v2324_v13, 0.0 }
 0x7f9   : > { %v2326_v17 = vpop.f32.mrf.mxu0 }
 0x7fa   : > { %v2330_v19 = vpack.c.bf16 %v2329_v16, %v2329_v16 }
 0x7fb   : > { %v3242_v22 = vpop.f32.mrf.mxu0 }
 0x7fc   : > { %3248 = vmatmul.mubr.msk.bf16.vlgmr.msra.gmra.mxu1 %vm1644_vm1, %v2330_v19 }
 0x7fd   : > { %3260 = vmatpush3.bf16.msra.mxu1 %v2433_v18  ;;  %v2424_v24 = vpop.f32.mrf.mxu0  ;;  %3263 = vmatprep.mubr.msk.bf16.mxu1 %vm4306_vm0, %v4305_v1 }
 0x7fe   : > { %v2425_v26 = vadd.f32 %v3070_v23, %v2424_v24  ;;  %3261 = vmatprep.subr.bf16.mxu1 %v4305_v1 }
 0x7ff   : > { %v3257_v29 = vpop.f32.mrf.mxu0 }
 0x800   : > { %v2430_v30 = vmax.f32 %v2425_v26, 0.0 }
 0x801   : > { %3262 = vmatpush3.bf16.msra.mxu1 %v2432_v25  ;;  %v2427_v31 = vpop.f32.mrf.mxu0 }
 0x802   : > { %v2431_v33 = vpack.c.bf16 %v2430_v30, %v2430_v30  ;;  %3275 = vmatprep.subr.bf16.mxu1 %v4305_v1 }
 0x803   : > { %v3258_v36 = vpop.f32.mrf.mxu0 }
 0x804   : > { %3264 = vmatmul.mubr.msk.bf16.vlgmr.msra.gmra.mxu1 %vm1644_vm1, %v2431_v33 }
 0x805   : > { %3276 = vmatpush3.bf16.msra.mxu1 %v2534_v32  ;;  %v2525_v38 = vpop.f32.mrf.mxu0  ;;  %3279 = vmatprep.mubr.msk.bf16.mxu1 %vm4306_vm0, %v4305_v1 }
 0x806   : > { %v2526_v40 = vadd.f32 %v3074_v37, %v2525_v38  ;;  %3277 = vmatprep.subr.bf16.mxu1 %v4305_v1 }
 0x807   : > { %v3273_v41 = vpop.f32.mrf.mxu0 }
 0x808   : > { %v2531_v42 = vmax.f32 %v2526_v40, 0.0 }
 0x809   : > { %3278 = vmatpush3.bf16.msra.mxu1 %v2533_v39  ;;  %v2528_v43 = vpop.f32.mrf.mxu0 }
 0x80a   : > { %v2532_v44 = vpack.c.bf16 %v2531_v42, %v2531_v42 }
 0x80b   : > { %v3274_v45 = vpop.f32.mrf.mxu0 }
 0x80c   : > { %3280 = vmatmul.mubr.msk.bf16.vlgmr.msra.gmra.mxu1 %vm1644_vm1, %v2532_v44 }
 0x8bc   : > { %v2376_v53 = vpop.f32.mrf.mxu1 }
 0x8bd   : > { %v2377_v54 = vadd.f32 %v3068_v52, %v2376_v53 }
 0x8be   : > { %v3249_v55 = vpop.f32.mrf.mxu1 }
 0x8bf   : > { %2637 = vst.msk [vmem:[%s4911_s15] sm:$0xff] %vm1644_vm1, %v2377_v54 }
 0x8c0   : > { %v2379_v56 = vpop.f32.mrf.mxu1  ;;  %2639 = vst.msk [vmem:[%s4911_s15] sm:$0xff] %vm2638_vm2, %v4307_v57 }
 0x8c2   : > { %v3250_v1 = vpop.f32.mrf.mxu1 }
 0x8c4   : > { %v2477_v59 = vpop.f32.mrf.mxu1 }
 0x8c5   : > { %v2478_v60 = vadd.f32 %v3072_v58, %v2477_v59 }
 0x8c6   : > { %v3265_v63 = vpop.f32.mrf.mxu1 }
 0x8c7   : > { %2641 = vrot.lane.b32.xlu0 %v2478_v60, %s4308_s2 }
 0x8c8   : > { %v2480_v0 = vpop.f32.mrf.mxu1 }
 0x8ca   : > { %v3266_v3 = vpop.f32.mrf.mxu1 }
 0x8cb   : > { %2649 = vrot.lane.b32.xlu0 %v2272_v2, %s4309_s0 }
 0x8cc   : > { %v2578_v5 = vpop.f32.mrf.mxu1 }
 0x8cd   : > { %v2579_v6 = vadd.f32 %v3076_v4, %v2578_v5 }
 0x8ce   : > { %v3281_v7 = vpop.f32.mrf.mxu1 }
 0x8cf   : > { %v2584_v8 = vmax.f32 %v2579_v6, 0.0 }
 0x8d0   : > { %v2581_v9 = vpop.f32.mrf.mxu1 }
 0x8d1   : > { %v2585_v10 = vpack.c.bf16 %v2584_v8, %v2584_v8 }
 0x8d2   : > { %v3282_v12 = vpop.f32.mrf.mxu1 }
 0x8d3   : > { %3288 = vmatmul.mubr.msk.bf16.vlgmr.msra.gmra.mxu0 %vm1644_vm1, %v2585_v10 }
 0x939   : > { %v2642_v13 = vpop.permute.xlu0 %2641 }
 0x93a   : > { %2645 = vst.msk [vmem:[%s4911_s15] sm:$0xff] %vm2644_vm3, %v2642_v13 }
 0x93b   : > { %2647 = vst.msk [vmem:[%s4911_s15] sm:$0xff] %vm2646_vm4, %v4307_v57 }
 0x93d   : > { %v2650_v62 = vpop.permute.xlu0 %2649 }
 0x93e   : > { %2653 = vst.msk [vmem:[%s4911_s15] sm:$0xff] %vm2652_vm5, %v2650_v62 }
 0x993   : > { %v2631_v14 = vpop.f32.mrf.mxu0 }
 0x994   : > { %v2632_v15 = vadd.f32 %v3078_v11, %v2631_v14 }
 0x995   : > { %v3289_v16 = vpop.f32.mrf.mxu0 }
 0x996   : > { %2655 = vrot.lane.b32.xlu1 %v2632_v15, %s4310_s6 }
 0x997   : > { %v2634_v17 = vpop.f32.mrf.mxu0 }
 0x999   : > { %v3290_v18 = vpop.f32.mrf.mxu0 }
 0xa08   : > { %v2656_v19 = vpop.permute.xlu1 %2655 }
 0xa09   : > { %2659 = vst.msk [vmem:[%s4911_s15] sm:$0xff] %vm2658_vm6, %v2656_v19 }
 0xa0a PF: > { %s105_s28 = sadd.s32 1, %s4238_s28  }
 0xa0b   : > { %p102_p4 = scmp.ge.s32.totalorder %s105_s28, 4  }
 0xa0d   :  { %104 = sbr.rel (!%p102_p4) target bundleno = 84 (0x54), region = 346 }
 0xa12   :  { %2679 = vsyncpa [#allocation4], 1 }
 0xa13   :  { %2681 = vsyncpa [#allocation4 + $0x1], 1 }
 0xa14   :  { %2682 = vsyncpa [#allocation6], 1 }
 0xa15   :  { %2683 = vsyncpa [#allocation9], 1 }
 0xa16   :  { %2684 = vsyncpa [#allocation12], 1 }
 0xa17   :  { %2685 = vsyncpa [#allocation15], 1 }
 0xa18   :  { %2686 = vsyncpa [#allocation18], 1 }
 0xa19   :  { %2687 = vsyncpa [#allocation21], 1 }
 0xa1a   :  { %2688 = vsyncpa [#allocation24], 1 }
 0xa1b   :  { %2689 = vsyncpa [#allocation27], 1 }
 0xa1c   :  { %2690 = vsyncpa [#allocation30], 1 }
 0xa1d   :  { %2691 = vsyncpa [#allocation33], 1 }
 0xa1e   :  { %2692 = vsyncpa [#allocation36], 1 }

</bundles_post_ra>
